<compile_context>
chip_gen: v6e
topology: v6e:2x2x1
jax: 0.10.0
libtpu: 0.0.40
codegen_flags: <defaults>
</compile_context>

<pallas_src>
import jax
import jax.numpy as jnp
from jax.experimental import pallas as pl
from jax.experimental.pallas import tpu as pltpu


def attention_kernel(enc_ref, dec_ref, mask_ref, cov_ref,
                     whT_ref, wc_ref, v_ref,
                     ctx_ref, attw_ref, covout_ref):
    bb, T, D = enc_ref.shape

    enc = enc_ref[...]              # (bb, T, D)  bf16 encoder_output block
    dec = dec_ref[...]              # (bb, 1, D)  f32 precomputed Ws(s_t) + b
    mask = mask_ref[...]            # (bb, 1, T)  f32 padding mask (lane-dense)
    cov = cov_ref[...]              # (bb, 1, T)  f32 coverage (lane-dense)

    # encoder_features = Wh(encoder_output): one big MXU matmul, bf16 operands,
    # f32 accumulate.  The reshape is layout-preserving (D is the full lane
    # dim, T is a multiple of 8), so it does not materialize a VMEM copy.
    enc_feat = jnp.dot(enc.reshape(bb * T, D), whT_ref[...],
                       preferred_element_type=jnp.float32).reshape(bb, T, D)

    # attn_inputs = enc_feat + dec_feat + coverage * wc      (f32, VPU)
    cov_col = jnp.transpose(cov, (0, 2, 1))          # (bb, T, 1) tiny relayout
    attn_in = enc_feat + dec + cov_col * wc_ref[...]
    e = jnp.tanh(attn_in)                            # EUP, f32

    # score = v(tanh(...)) on the MXU, produced directly lane-major (bb, 1, T)
    vb = jnp.broadcast_to(v_ref[...], (bb, 1, D))
    score = jnp.einsum('bqd,btd->bqt', vb, e,
                       preferred_element_type=jnp.float32)   # (bb, 1, T)

    # Fused masked softmax over T (identical to softmax -> mask -> renorm).
    # Precondition (same as the PyTorch module): every row has >= 1 unmasked
    # token, otherwise the denominator is 0 and the result is NaN.
    m = jnp.max(score, axis=2, keepdims=True)        # (bb, 1, 1)
    p = jnp.exp(score - m) * mask                    # (bb, 1, T)
    denom = jnp.sum(p, axis=2, keepdims=True)        # (bb, 1, 1)
    w = p / denom                                    # (bb, 1, T) f32

    # context_vector = w @ encoder_output on the MXU -> lane-dense (bb, 1, D)
    ctx_ref[...] = jnp.einsum('bqt,btd->bqd', w.astype(enc.dtype), enc,
                              preferred_element_type=jnp.float32)
    attw_ref[...] = w
    covout_ref[...] = cov + w


def _pick_batch_block(B, T, D, *, enc_block_bytes=2 * 1024 * 1024):
    """Pick BB so BB*T gives the MXU >= 256 rows, the bf16 encoder block stays
    under `enc_block_bytes` (leaving VMEM room for the f32 temporaries), and
    the grid stays exact.  Raise enc_block_bytes on v6e for larger tiles;
    keep it (and a >= 2-4 step grid) on v7x / v5e."""
    bb_rows = max(1, -(-256 // T))                      # ceil(256 / T)
    bb_mem = max(1, enc_block_bytes // (T * D * 2))     # bf16 enc block cap
    bb = max(1, min(B, bb_rows, bb_mem))
    while B % bb:                                       # keep the grid exact
        bb -= 1
    return bb


def pgn_attention(encoder_output, s_t, x_padding_masks, coverage_vector,
                  Wh_w, Ws_w, Ws_b, wc_w, v_w, *, batch_block=None):
    """Weights use PyTorch Linear convention (out_features, in_features)."""
    B, T, D = encoder_output.shape
    assert T % 8 == 0, "T must be a multiple of 8 (sublane tiling)"
    assert D % 128 == 0, "D must be a multiple of 128 (lane tiling)"

    # --- hoisted out of the kernel -------------------------------------
    # decoder_features = Ws(s_t) + b : one batched XLA matmul.
    dec_feat = (s_t @ Ws_w.T + Ws_b).reshape(B, 1, D).astype(jnp.float32)

    # bf16 MXU operands (f32 accumulate happens inside the kernel).
    # In a decode loop, hoist these casts (and ideally the whole
    # Wh(encoder_output) projection) out of the per-step path.
    enc_bf16 = encoder_output.astype(jnp.bfloat16)          # (B, T, D)
    whT_bf16 = Wh_w.T.astype(jnp.bfloat16)                  # (D, D)

    wc_row = wc_w.reshape(1, D).astype(jnp.float32)          # Linear(1, D) weight is (D, 1)
    v_row = v_w.reshape(1, 1, D).astype(jnp.float32)         # Linear(D, 1) weight is (1, D)

    # Lane-dense (T on the lane axis) mask / coverage.
    mask_l = x_padding_masks.reshape(B, 1, T).astype(jnp.float32)
    cov_l = coverage_vector.reshape(B, 1, T).astype(jnp.float32)

    bb = batch_block if batch_block is not None else _pick_batch_block(B, T, D)
    assert B % bb == 0
    grid = (B // bb,)

    out_shapes = (
        jax.ShapeDtypeStruct((B, 1, D), jnp.float32),   # context_vector
        jax.ShapeDtypeStruct((B, 1, T), jnp.float32),   # attention_weights
        jax.ShapeDtypeStruct((B, 1, T), jnp.float32),   # updated coverage
    )
    in_specs = [
        pl.BlockSpec((bb, T, D), lambda i: (i, 0, 0)),   # encoder_output (bf16)
        pl.BlockSpec((bb, 1, D), lambda i: (i, 0, 0)),   # dec_feat (hoisted)
        pl.BlockSpec((bb, 1, T), lambda i: (i, 0, 0)),   # padding mask
        pl.BlockSpec((bb, 1, T), lambda i: (i, 0, 0)),   # coverage
        pl.BlockSpec((D, D), lambda i: (0, 0)),          # Wh^T (grid-invariant)
        pl.BlockSpec((1, D), lambda i: (0, 0)),          # wc row
        pl.BlockSpec((1, 1, D), lambda i: (0, 0, 0)),    # v row
    ]
    out_specs = [
        pl.BlockSpec((bb, 1, D), lambda i: (i, 0, 0)),
        pl.BlockSpec((bb, 1, T), lambda i: (i, 0, 0)),
        pl.BlockSpec((bb, 1, T), lambda i: (i, 0, 0)),
    ]

    ctx3, attw3, covout3 = pl.pallas_call(
        attention_kernel,
        out_shape=out_shapes,
        grid_spec=pltpu.PrefetchScalarGridSpec(
            num_scalar_prefetch=0,
            grid=grid,
            in_specs=in_specs,
            out_specs=out_specs,
        ),
        compiler_params=pltpu.CompilerParams(
            dimension_semantics=("parallel",),           # megacore on v7x
            vmem_limit_bytes=32 * 1024 * 1024),
    )(enc_bf16, dec_feat, mask_l, cov_l, whT_bf16, wc_row, v_row)

    return (ctx3.reshape(B, D),
            attw3.reshape(B, T),
            covout3.reshape(B, T))


def reference(encoder_output, s_t, mask, cov, Wh_w, Ws_w, Ws_b, wc_w, v_w):
    """Pure-JAX mirror of the PyTorch forward (config.coverage=True), f32."""
    enc_feat = encoder_output @ Wh_w.T                       # (B, T, D)
    dec_feat = s_t @ Ws_w.T + Ws_b                           # (B, D)
    cov_feat = cov[..., None] * wc_w[:, 0]                   # (B, T, D)
    attn_in = enc_feat + dec_feat[:, None, :] + cov_feat
    score = jnp.squeeze(jnp.tanh(attn_in) @ v_w.T, axis=2)   # (B, T)
    w = jax.nn.softmax(score, axis=1)
    w = w * mask
    w = w / jnp.sum(w, axis=1, keepdims=True)
    ctx = jnp.einsum('bt,btd->bd', w, encoder_output)
    return ctx, w, cov + w


if __name__ == "__main__":
    B, T, H = 16, 32, 64
    D = 2 * H                                   # 128: lane-aligned

    key = jax.random.PRNGKey(0)
    keys = jax.random.split(key, 9)

    # Parameters (PyTorch Linear conventions).
    Wh_w = 0.1 * jax.random.normal(keys[0], (D, D), jnp.float32)   # Linear(D, D, bias=False)
    Ws_w = 0.1 * jax.random.normal(keys[1], (D, D), jnp.float32)   # Linear(D, D)
    Ws_b = 0.1 * jax.random.normal(keys[2], (D,), jnp.float32)
    wc_w = 0.1 * jax.random.normal(keys[3], (D, 1), jnp.float32)   # Linear(1, D, bias=False)
    v_w = 0.1 * jax.random.normal(keys[4], (1, D), jnp.float32)    # Linear(D, 1, bias=False)

    # Inputs.
    h_dec = jax.random.normal(keys[5], (1, B, H), jnp.float32)     # LSTM hidden state
    c_dec = jax.random.normal(keys[6], (1, B, H), jnp.float32)     # LSTM cell state
    encoder_output = jax.random.normal(keys[7], (B, T, D), jnp.float32)
    coverage_vector = jax.random.uniform(keys[8], (B, T), jnp.float32)

    # x_padding_masks: 1 for real tokens, 0 for padding (all lengths >= 1).
    lengths = (T - (jnp.arange(B) * 5) % T).astype(jnp.int32)
    x_padding_masks = (jnp.arange(T)[None, :] < lengths[:, None]).astype(jnp.float32)

    # s_t = cat([h, c], dim=2).transpose(0, 1) -> (B, 1, D) -> (B, D)
    s_t = jnp.transpose(jnp.concatenate([h_dec, c_dec], axis=2), (1, 0, 2)).reshape(B, D)

    ctx, attw, cov_new = pgn_attention(
        encoder_output, s_t, x_padding_masks, coverage_vector,
        Wh_w, Ws_w, Ws_b, wc_w, v_w)
    jax.block_until_ready((ctx, attw, cov_new))

    ctx_r, attw_r, cov_r = reference(
        encoder_output, s_t, x_padding_masks, coverage_vector,
        Wh_w, Ws_w, Ws_b, wc_w, v_w)

    # Tolerances account for bf16 MXU operands (f32 accumulate) vs. the pure
    # f32 reference.
    assert jnp.allclose(ctx, ctx_r, atol=2e-2, rtol=2e-2)
    assert jnp.allclose(attw, attw_r, atol=2e-2, rtol=2e-2)
    assert jnp.allclose(cov_new, cov_r, atol=2e-2, rtol=2e-2)

    print("KERNEL_OK")
</pallas_src>

<mosaic_0001>
module attributes {stable_mosaic.version = 11 : i64} {
  func.func @attention_kernel(%arg0: i32, %arg1: memref<8x32x128xbf16, #tpu.memory_space<vmem>>, %arg2: memref<8x1x128xf32, #tpu.memory_space<vmem>>, %arg3: memref<8x1x32xf32, #tpu.memory_space<vmem>>, %arg4: memref<8x1x32xf32, #tpu.memory_space<vmem>>, %arg5: memref<128x128xbf16, #tpu.memory_space<vmem>>, %arg6: memref<1x128xf32, #tpu.memory_space<vmem>>, %arg7: memref<1x1x128xf32, #tpu.memory_space<vmem>>, %arg8: memref<8x1x128xf32, #tpu.memory_space<vmem>>, %arg9: memref<8x1x32xf32, #tpu.memory_space<vmem>>, %arg10: memref<8x1x32xf32, #tpu.memory_space<vmem>>) attributes {dimension_semantics = [#tpu.dimension_semantics<parallel>], iteration_bounds = array<i64: 2>, scalar_prefetch = 0 : i64, scratch_operands = 0 : i64, tpu.core_type = #tpu.core_type<tc>, window_params = [{transform_indices = @transform_0, window_bounds = array<i64: 8, 32, 128>}, {transform_indices = @transform_1, window_bounds = array<i64: 8, 1, 128>}, {transform_indices = @transform_2, window_bounds = array<i64: 8, 1, 32>}, {transform_indices = @transform_3, window_bounds = array<i64: 8, 1, 32>}, {pipeline_mode = #tpu.pipeline_mode<synchronous>, transform_indices = @transform_4, window_bounds = array<i64: 128, 128>}, {pipeline_mode = #tpu.pipeline_mode<synchronous>, transform_indices = @transform_5, window_bounds = array<i64: 1, 128>}, {pipeline_mode = #tpu.pipeline_mode<synchronous>, transform_indices = @transform_6, window_bounds = array<i64: 1, 1, 128>}, {transform_indices = @transform_7, window_bounds = array<i64: 8, 1, 128>}, {transform_indices = @transform_8, window_bounds = array<i64: 8, 1, 32>}, {transform_indices = @transform_9, window_bounds = array<i64: 8, 1, 32>}]} {
    %c0 = arith.constant 0 : index
    %c0_0 = arith.constant 0 : index
    %c0_1 = arith.constant 0 : index
    %0 = vector.load %arg1[%c0, %c0_0, %c0_1] : memref<8x32x128xbf16, #tpu.memory_space<vmem>>, vector<8x32x128xbf16>
    %c0_2 = arith.constant 0 : index
    %c0_3 = arith.constant 0 : index
    %c0_4 = arith.constant 0 : index
    %1 = vector.load %arg2[%c0_2, %c0_3, %c0_4] : memref<8x1x128xf32, #tpu.memory_space<vmem>>, vector<8x1x128xf32>
    %c0_5 = arith.constant 0 : index
    %c0_6 = arith.constant 0 : index
    %c0_7 = arith.constant 0 : index
    %2 = vector.load %arg3[%c0_5, %c0_6, %c0_7] : memref<8x1x32xf32, #tpu.memory_space<vmem>>, vector<8x1x32xf32>
    %c0_8 = arith.constant 0 : index
    %c0_9 = arith.constant 0 : index
    %c0_10 = arith.constant 0 : index
    %3 = vector.load %arg4[%c0_8, %c0_9, %c0_10] : memref<8x1x32xf32, #tpu.memory_space<vmem>>, vector<8x1x32xf32>
    %4 = vector.shape_cast %0 : vector<8x32x128xbf16> to vector<256x128xbf16>
    %c0_11 = arith.constant 0 : index
    %c0_12 = arith.constant 0 : index
    %5 = vector.load %arg5[%c0_11, %c0_12] : memref<128x128xbf16, #tpu.memory_space<vmem>>, vector<128x128xbf16>
    %cst = arith.constant dense<0.000000e+00> : vector<256x128xf32>
    %6 = tpu.matmul %4, %5, %cst {dimension_numbers = #tpu.dot_dimension_numbers<[1], [0], [0], [1], [0, 0, 1, 1], [], []>} : vector<256x128xbf16>, vector<128x128xbf16>, vector<256x128xf32> -> vector<256x128xf32>
    %7 = vector.shape_cast %6 : vector<256x128xf32> to vector<8x32x128xf32>
    %8 = tpu.transpose %3, [0, 2, 1] : vector<8x1x32xf32> -> vector<8x32x1xf32>
    %9 = vector.broadcast %1 : vector<8x1x128xf32> to vector<8x32x128xf32>
    %10 = arith.addf %7, %9 : vector<8x32x128xf32>
    %c0_13 = arith.constant 0 : index
    %c0_14 = arith.constant 0 : index
    %11 = vector.load %arg6[%c0_13, %c0_14] : memref<1x128xf32, #tpu.memory_space<vmem>>, vector<1x128xf32>
    %12 = vector.shape_cast %11 : vector<1x128xf32> to vector<1x1x128xf32>
    %13 = vector.broadcast %8 : vector<8x32x1xf32> to vector<8x32x128xf32>
    %14 = vector.broadcast %12 : vector<1x1x128xf32> to vector<8x32x128xf32>
    %15 = arith.mulf %13, %14 : vector<8x32x128xf32>
    %16 = arith.addf %10, %15 : vector<8x32x128xf32>
    %17 = math.tanh %16 : vector<8x32x128xf32>
    %c0_15 = arith.constant 0 : index
    %c0_16 = arith.constant 0 : index
    %c0_17 = arith.constant 0 : index
    %18 = vector.load %arg7[%c0_15, %c0_16, %c0_17] : memref<1x1x128xf32, #tpu.memory_space<vmem>>, vector<1x1x128xf32>
    %19 = vector.shape_cast %18 : vector<1x1x128xf32> to vector<1x1x128xf32>
    %20 = vector.broadcast %19 : vector<1x1x128xf32> to vector<8x1x128xf32>
    "tpu.trace_start"() <{level = 10 : i32, message = "bqd,btd->bqt"}> : () -> ()
    %cst_18 = arith.constant dense<0.000000e+00> : vector<8x1x32xf32>
    %21 = tpu.matmul %20, %17, %cst_18 {dimension_numbers = #tpu.dot_dimension_numbers<[2], [2], [1], [1], [0, 0, 0, 1, 1, 1], [0], [0]>} : vector<8x1x128xf32>, vector<8x32x128xf32>, vector<8x1x32xf32> -> vector<8x1x32xf32>
    "tpu.trace_stop"() : () -> ()
    %cst_19 = arith.constant dense<0xFF800000> : vector<8x1xf32>
    %22 = vector.multi_reduction <maximumf>, %21, %cst_19 [2] : vector<8x1x32xf32> to vector<8x1xf32>
    %23 = vector.shape_cast %22 : vector<8x1xf32> to vector<8x1x1xf32>
    %24 = vector.broadcast %23 : vector<8x1x1xf32> to vector<8x1x32xf32>
    %25 = arith.subf %21, %24 : vector<8x1x32xf32>
    %26 = math.exp %25 : vector<8x1x32xf32>
    %27 = arith.mulf %26, %2 : vector<8x1x32xf32>
    %cst_20 = arith.constant dense<0.000000e+00> : vector<8x1xf32>
    %28 = vector.multi_reduction <add>, %27, %cst_20 [2] : vector<8x1x32xf32> to vector<8x1xf32>
    %29 = vector.shape_cast %28 : vector<8x1xf32> to vector<8x1x1xf32>
    %30 = vector.broadcast %29 : vector<8x1x1xf32> to vector<8x1x32xf32>
    %31 = arith.divf %27, %30 : vector<8x1x32xf32>
    %32 = arith.truncf %31 : vector<8x1x32xf32> to vector<8x1x32xbf16>
    "tpu.trace_start"() <{level = 10 : i32, message = "bqt,btd->bqd"}> : () -> ()
    %cst_21 = arith.constant dense<0.000000e+00> : vector<8x1x128xf32>
    %33 = tpu.matmul %32, %0, %cst_21 {dimension_numbers = #tpu.dot_dimension_numbers<[2], [1], [1], [2], [0, 0, 0, 1, 1, 2], [0], [0]>} : vector<8x1x32xbf16>, vector<8x32x128xbf16>, vector<8x1x128xf32> -> vector<8x1x128xf32>
    "tpu.trace_stop"() : () -> ()
    %c0_22 = arith.constant 0 : index
    %c0_23 = arith.constant 0 : index
    %c0_24 = arith.constant 0 : index
    %34 = vector.load %arg8[%c0_22, %c0_23, %c0_24] : memref<8x1x128xf32, #tpu.memory_space<vmem>>, vector<8x1x128xf32>
    tpu.vector_store %arg8[%c0_22, %c0_23, %c0_24], %33 {strides = array<i32>} : memref<8x1x128xf32, #tpu.memory_space<vmem>>, vector<8x1x128xf32>,
    %c0_25 = arith.constant 0 : index
    %c0_26 = arith.constant 0 : index
    %c0_27 = arith.constant 0 : index
    %35 = vector.load %arg9[%c0_25, %c0_26, %c0_27] : memref<8x1x32xf32, #tpu.memory_space<vmem>>, vector<8x1x32xf32>
    tpu.vector_store %arg9[%c0_25, %c0_26, %c0_27], %31 {strides = array<i32>} : memref<8x1x32xf32, #tpu.memory_space<vmem>>, vector<8x1x32xf32>,
    %36 = arith.addf %3, %31 : vector<8x1x32xf32>
    %c0_28 = arith.constant 0 : index
    %c0_29 = arith.constant 0 : index
    %c0_30 = arith.constant 0 : index
    %37 = vector.load %arg10[%c0_28, %c0_29, %c0_30] : memref<8x1x32xf32, #tpu.memory_space<vmem>>, vector<8x1x32xf32>
    tpu.vector_store %arg10[%c0_28, %c0_29, %c0_30], %36 {strides = array<i32>} : memref<8x1x32xf32, #tpu.memory_space<vmem>>, vector<8x1x32xf32>,
    return
  }
  func.func @transform_0(%arg0: i32) -> (i32, i32, i32) {
    %c0_i32 = arith.constant 0 : i32
    %c0_i32_0 = arith.constant 0 : i32
    %c0_i32_1 = arith.constant 0 : i32
    return %arg0, %c0_i32, %c0_i32_0 : i32, i32, i32
  }
  func.func @transform_1(%arg0: i32) -> (i32, i32, i32) {
    %c0_i32 = arith.constant 0 : i32
    %c0_i32_0 = arith.constant 0 : i32
    %c0_i32_1 = arith.constant 0 : i32
    return %arg0, %c0_i32, %c0_i32_0 : i32, i32, i32
  }
  func.func @transform_2(%arg0: i32) -> (i32, i32, i32) {
    %c0_i32 = arith.constant 0 : i32
    %c0_i32_0 = arith.constant 0 : i32
    %c0_i32_1 = arith.constant 0 : i32
    return %arg0, %c0_i32, %c0_i32_0 : i32, i32, i32
  }
  func.func @transform_3(%arg0: i32) -> (i32, i32, i32) {
    %c0_i32 = arith.constant 0 : i32
    %c0_i32_0 = arith.constant 0 : i32
    %c0_i32_1 = arith.constant 0 : i32
    return %arg0, %c0_i32, %c0_i32_0 : i32, i32, i32
  }
  func.func @transform_4(%arg0: i32) -> (i32, i32) {
    %c0_i32 = arith.constant 0 : i32
    %c0_i32_0 = arith.constant 0 : i32
    %c0_i32_1 = arith.constant 0 : i32
    return %c0_i32, %c0_i32_0 : i32, i32
  }
  func.func @transform_5(%arg0: i32) -> (i32, i32) {
    %c0_i32 = arith.constant 0 : i32
    %c0_i32_0 = arith.constant 0 : i32
    %c0_i32_1 = arith.constant 0 : i32
    return %c0_i32, %c0_i32_0 : i32, i32
  }
  func.func @transform_6(%arg0: i32) -> (i32, i32, i32) {
    %c0_i32 = arith.constant 0 : i32
    %c0_i32_0 = arith.constant 0 : i32
    %c0_i32_1 = arith.constant 0 : i32
    %c0_i32_2 = arith.constant 0 : i32
    return %c0_i32, %c0_i32_0, %c0_i32_1 : i32, i32, i32
  }
  func.func @transform_7(%arg0: i32) -> (i32, i32, i32) {
    %c0_i32 = arith.constant 0 : i32
    %c0_i32_0 = arith.constant 0 : i32
    %c0_i32_1 = arith.constant 0 : i32
    return %arg0, %c0_i32, %c0_i32_0 : i32, i32, i32
  }
  func.func @transform_8(%arg0: i32) -> (i32, i32, i32) {
    %c0_i32 = arith.constant 0 : i32
    %c0_i32_0 = arith.constant 0 : i32
    %c0_i32_1 = arith.constant 0 : i32
    return %arg0, %c0_i32, %c0_i32_0 : i32, i32, i32
  }
  func.func @transform_9(%arg0: i32) -> (i32, i32, i32) {
    %c0_i32 = arith.constant 0 : i32
    %c0_i32_0 = arith.constant 0 : i32
    %c0_i32_1 = arith.constant 0 : i32
    return %arg0, %c0_i32, %c0_i32_0 : i32, i32, i32
  }
}

</mosaic_0001>

<bundles_post_ra>
// kernel: tpu_custom_call.1
= control target key start
LH: loop header
LB: loop body
LE: loop exit
PB: predicated region body
PF: predicated region fallthrough
CT: control target
= control target key end

     0   :  { %s4489_s0 = inlined_call_operand.hbm [shape: bf16[16,32,128], index: 0, kind: input, shape index: {}]   ;;  %s4490_s1 = inlined_call_operand.hbm [shape: f32[16,1,128], index: 1, kind: input, shape index: {}]   ;;  %s4491_s2 = inlined_call_operand.hbm [shape: f32[16,1,32], index: 2, kind: input, shape index: {}]   ;;  %s4492_s3 = inlined_call_operand.hbm [shape: f32[16,1,32], index: 3, kind: input, shape index: {}]   ;;  %s4493_s4 = inlined_call_operand.hbm [shape: bf16[128,128], index: 4, kind: input, shape index: {}]   ;;  %s4494_s5 = inlined_call_operand.vmem [shape: f32[1,128], index: 5, kind: input, shape index: {}]   ;;  %s4495_s6 = inlined_call_operand.vmem [shape: f32[1,1,128], index: 6, kind: input, shape index: {}]   ;;  %s4496_s7 = inlined_call_operand.hbm [shape: f32[16,1,128], index: 7, kind: output, shape index: {0}]   ;;  %s4497_s8 = inlined_call_operand.hbm [shape: f32[16,1,32], index: 8, kind: output, shape index: {1}]   ;;  %s4498_s9 = inlined_call_operand.hbm [shape: f32[16,1,32], index: 9, kind: output, shape index: {2}]  }
   0x1   :  { %4515 = sst [smem:[#allocation26_spill]] %s4490_s1 }
   0x2   :  { %4516 = sst [smem:[#allocation27_spill]] %s4493_s4 }
   0x3   :  { %4517 = sst [smem:[#allocation28_spill]] %s4496_s7 }
   0x4   :  { %4518 = sst [smem:[#allocation29_spill]] %s4498_s9 }
   0x5   :  { %15 = vsyncpa [#allocation3], 0 }
   0x6   :  { %17 = vsyncpa [#allocation3 + $0x1], 0 }
   0x7   :  { %18 = vsyncpa [#allocation6], 0 }
   0x8   :  { %20 = vsyncpa [#allocation6 + $0x1], 0 }
   0x9   :  { %21 = vsyncpa [#allocation9], 0 }
   0xa   :  { %23 = vsyncpa [#allocation9 + $0x1], 0 }
   0xb   :  { %24 = vsyncpa [#allocation4], 0 }
   0xc   :  { %26 = vsyncpa [#allocation4 + $0x1], 0 }
   0xd   :  { %27 = vsyncpa [#allocation13], 0 }
   0xe   :  { %29 = vsyncpa [#allocation13 + $0x1], 0  ;;  %s3735_s30 = smov 0   ;;  %s3737_s10 = smov 0  }
   0xf   :  { %s3739_s11 = smov 0   ;;  %s3741_s12 = smov 0  }
  0x10 LB: > { %4519 = sst [smem:[#allocation21_spill]] %s3654_s30  ;;  %s3756_s13 = sadd.s32 4294967295, %s3666_s12   ;;  %s3666_s12 = sphi %s3741_s12, %s4551_s12   ;;  %s3662_s11 = sphi %s3739_s11, %s4553_s11   ;;  %s3658_s10 = sphi %s3737_s10, %s4555_s10   ;;  %s3654_s30 = sphi %s3735_s30, %s4554_s30  }
  0x11   : > { %4520 = sst [smem:[#allocation22_spill]] %s3662_s11  ;;  %s4502_s14 = sadd.s32 4294967294, %s3666_s12  }
  0x12   : > { %s3760_s15 = sadd.s32 1, %s3666_s12   ;;  %s42_s16 = sadd.s32 1, %s3662_s11 }
  0x13   : > { %4521 = sst [smem:[#allocation23_spill]] %s3760_s15  ;;  %s39_s17 = ssub.s32 %s3666_s12, %s3760_s15 }
  0x14   : > { %p49_p0 = scmp.ne.s32.totalorder %s3662_s11, %s3658_s10  ;;  %p40_p1 = scmp.eq.s32.totalorder %s39_s17, 0 }
  0x15   : > { %p50_p2 = scmp.eq.s32.totalorder %s3666_s12, 0  ;;  %p55_p3 = scmp.ne.s32.totalorder %s3658_s10, %s3654_s30 }
  0x16   : > { %p4510_p4 = scmp.eq.s32.totalorder %s3756_s13, 0  ;;  %p220_p7 = scmp.eq.s32.totalorder %s3756_s13, 1 }
  0x17   : > { %s3772_s18 = scalar_select %p40_p1, %s3662_s11, %s42_s16  }
  0x18   : > { %p3774_p5 = por %p50_p2, %p49_p0  ;;  %p3780_p6 = por %p4510_p4, %p55_p3 }
  0x19   : > { %4522 = sst [smem:[#allocation24_spill]] %s3772_s18  ;;  %p226_p8 = scmp.eq.s32.totalorder %s4502_s14, 1 }
  0x1a   : > { %s4524_s20 = scalar_select %p3780_p6, 1, 0 }
  0x1b   : > { %p2794_p9 = scmp.ge.s32.totalorder %s3666_s12, 1  ;;  %p285_p10 = scmp.lt.s32.totalorder %s3666_s12, 3 }
  0x1c   : > { %p3789_p11 = por %p220_p7, %p49_p0  ;;  %p3793_p12 = por %p226_p8, %p55_p3 }
  0x1d   : > { %p3797_p13 = pnand %p2794_p9, %p285_p10  ;;  %s3668_s24 = smov [#allocation10]  }
  0x1e   : > { %s4525_s21 = scalar_select %p3789_p11, 1, 0 }
  0x1f   : > { %s4526_s22 = scalar_select %p3793_p12, 1, 0 }
  0x20   : > { %s4528_s23 = scalar_select %p3797_p13, 1, 0 }
  0x21   : > { %4527 = sst [smem:[#allocation25_spill]] %s4526_s22  ;;  %p3185_p1 = pneg %p3797_p13 }
  0x22   : > { %s297_s25 = sshll.u32 %s3668_s24, 4  ;;  %p3213_p3 = scmp.lt.s32.totalorder %s3666_s12, 2  ;;  %s298_s25 = int_to_ptr.vmem [resolvable:$true] %s297_s25 }
  0x23   : > { %p3805_p2 = pnand %p3185_p1, %p4510_p4  ;;  %s3812_s27 = sand.u32 1, %s3662_s11  }
  0x24   : > { %s3407_s29 = scalar_lea.vmem %s298_s25, 1024  ;;  %p3415_p12 = scmp.lt.s32.totalorder %s298_s25, %s298_s25 }
  0x25   : > { %p3398_p7 = pneg %p3805_p2  ;;  %p3408_p8 = scmp.ne.s32.totalorder %s298_s25, %s3407_s29 }
  0x26   : > { %p3416_p11 = scmp.lt.s32.totalorder %s3407_s29, %s3407_s29 }
  0x27   : > { %p3410_p9 = pnand %p3408_p8, %p3398_p7 }
  0x28   : > { %p3417_p6 = por %p3416_p11, %p3415_p12 }
  0x29   : > { %p3411_p10 = pneg %p3410_p9 }
  0x2b   : > { %p3418_p13 = pnand %p3417_p6, %p3411_p10 }
  0x2d   : > { %3421 = shalt.err (!%p3418_p13)
}
  0x2e   : > { %s4506_s16 = smov 64   ;;  %s4507_s17 = smov 4  }
  0x2f   : > { %s4530_s4 = sld [smem:[#allocation27_spill]]  ;;  %p3829_p6 = pnand %p3213_p3, %p3774_p5 }
  0x30   : > { %s3834_s28 = sshll.u32 %s3812_s27, 3  ;;  %s3837_s18 = sshll.u32 %s3666_s12, 7 }
  0x31   : > { %s4532_s1 = sld [smem:[#allocation26_spill]]  ;;  %s343_s14 = scalar_lea.vmem [#allocation5], %s3834_s28 }
  0x32   : > { %s350_s19 = sshll.u32 %s343_s14, 4  ;;  %p3856_p11 = pneg %p3829_p6  ;;  %s3846_s19 = int_to_ptr.vmem [resolvable:$true] %s350_s19 }
  0x35   : > { %3188 = dma.hbm_to_vmem [thread:$0]  (!%p3805_p2), %s4530_s4, 1024, %s298_s25, [#allocation9], %s4506_s16, %s4506_s16, %s4507_s17  }
  0x36   : > { %s4533_s25 = sand.u32 1, %s3666_s12  }
  0x37   : > { %s3843_s15 = scalar_lea.hbm %s4532_s1, %s3837_s18  ;;  %s3850_s24 = scalar_lea.sflag [#allocation6], %s4533_s25 }
  0x38   : > { %s3422_s16 = scalar_lea.hbm %s3843_s15, 128  ;;  %s3427_s14 = scalar_lea.hbm %s4532_s1, 256 }
  0x39   : > { %p3423_p5 = scmp.ne.s32.totalorder %s3843_s15, %s3422_s16  ;;  %p3428_p1 = scmp.lt.s32.totalorder %s3843_s15, %s4532_s1 }
  0x3a   : > { %p3429_p2 = scmp.lt.s32.totalorder %s3427_s14, %s3422_s16 }
  0x3b   : > { %p3425_p12 = pnand %p3856_p11, %p3423_p5 }
  0x3c   : > { %p3430_p3 = por %p3429_p2, %p3428_p1 }
  0x3d   : > { %p3426_p13 = pneg %p3425_p12 }
  0x3f   : > { %p3431_p7 = pnand %p3430_p3, %p3426_p13 }
  0x41   : > { %3434 = shalt.err (!%p3431_p7)
}
  0x42   : > { %s3435_s25 = scalar_lea.vmem %s3846_s19, 128  ;;  %s3671_s30 = smov [#allocation5]  }
  0x43   : > { %p3436_p8 = scmp.ne.s32.totalorder %s3846_s19, %s3435_s25  ;;  %s3440_s11 = sshll.u32 %s3671_s30, 4  ;;  %s3441_s11 = int_to_ptr.vmem [resolvable:$false] %s3440_s11 }
  0x44   : > { %s3442_s26 = scalar_lea.vmem %s3441_s11, 256  ;;  %p3443_p5 = scmp.lt.s32.totalorder %s3846_s19, %s3441_s11 }
  0x45   : > { %p3438_p9 = pnand %p3436_p8, %p3856_p11  ;;  %p3444_p12 = scmp.lt.s32.totalorder %s3442_s26, %s3435_s25 }
  0x47   : > { %p3439_p10 = pneg %p3438_p9  ;;  %p3445_p0 = por %p3444_p12, %p3443_p5 }
  0x49   : > { %p3446_p4 = pnand %p3445_p0, %p3439_p10 }
  0x4b   : > { %3449 = shalt.err (!%p3446_p4)
}
  0x4c   : > { %s4513_s4 = smov 16   ;;  %s3673_s22 = smov 1  }
  0x4d   : > { %3195 = dma.hbm_to_vmem [thread:$0]  (!%p3829_p6), %s3843_s15, 128, %s3846_s19, %s3850_s24, %s4513_s4, %s4513_s4, %s3673_s22  }
  0x4e   : > { %s2797_s30 = sshll.u32 %s3812_s27, 7  ;;  %s2872_s16 = sshll.u32 %s3666_s12, 11 }
  0x4f   : > { %s3887_s11 = scalar_lea.hbm %s4489_s0, %s2872_s16  ;;  %s321_s26 = scalar_lea.vmem [#allocation2], %s2797_s30 }
  0x50   : > { %s329_s1 = sshll.u32 %s321_s26, 4  ;;  %s318_s7 = scalar_lea.sflag [#allocation3], %s3812_s27  ;;  %s3889_s1 = int_to_ptr.vmem [resolvable:$true] %s329_s1 }
  0x51   : > { %s3450_s9 = scalar_lea.hbm %s3887_s11, 2048  ;;  %s3455_s4 = scalar_lea.hbm %s4489_s0, 4096 }
  0x52   : > { %p3451_p4 = scmp.ne.s32.totalorder %s3887_s11, %s3450_s9  ;;  %p3456_p1 = scmp.lt.s32.totalorder %s3887_s11, %s4489_s0 }
  0x53   : > { %p3457_p2 = scmp.lt.s32.totalorder %s3455_s4, %s3450_s9 }
  0x54   : > { %p3453_p0 = pnand %p3451_p4, %p3856_p11 }
  0x55   : > { %p3458_p3 = por %p3457_p2, %p3456_p1 }
  0x56   : > { %p3454_p13 = pneg %p3453_p0 }
  0x58   : > { %p3459_p7 = pnand %p3458_p3, %p3454_p13 }
  0x5a   : > { %3462 = shalt.err (!%p3459_p7)
}
  0x5b   : > { %s3463_s27 = scalar_lea.vmem %s3889_s1, 2048  ;;  %s3674_s30 = smov [#allocation2]  }
  0x5c   : > { %p3464_p8 = scmp.ne.s32.totalorder %s3889_s1, %s3463_s27  ;;  %s3468_s25 = sshll.u32 %s3674_s30, 4  ;;  %s3469_s25 = int_to_ptr.vmem [resolvable:$false] %s3468_s25 }
  0x5d   : > { %s3470_s26 = scalar_lea.vmem %s3469_s25, 4096  ;;  %p3471_p5 = scmp.lt.s32.totalorder %s3889_s1, %s3469_s25 }
  0x5e   : > { %p3466_p9 = pnand %p3464_p8, %p3856_p11  ;;  %p3472_p12 = scmp.lt.s32.totalorder %s3470_s26, %s3463_s27 }
  0x60   : > { %p3467_p10 = pneg %p3466_p9  ;;  %p3473_p4 = por %p3472_p12, %p3471_p5 }
  0x62   : > { %p3474_p0 = pnand %p3473_p4, %p3467_p10 }
  0x64   : > { %3477 = shalt.err (!%p3474_p0)
}
  0x65   : > { %s4535_s9 = smov 4   ;;  %s4536_s4 = smov 64  }
  0x66   : > { %3192 = dma.hbm_to_vmem [thread:$0]  (!%p3829_p6), %s3887_s11, 2048, %s3889_s1, %s318_s7, %s4536_s4, %s4536_s4, %s4535_s9  }
  0x67   : > { %s3919_s14 = scalar_lea.hbm %s4491_s2, %s3837_s18  ;;  %s364_s16 = scalar_lea.vmem [#allocation7], %s3834_s28 }
  0x68   : > { %s371_s27 = sshll.u32 %s364_s16, 4  ;;  %s3478_s30 = scalar_lea.hbm %s3919_s14, 128  ;;  %s372_s27 = int_to_ptr.vmem [resolvable:$true] %s371_s27 }
  0x69   : > { %p3479_p13 = scmp.ne.s32.totalorder %s3919_s14, %s3478_s30  ;;  %s3483_s1 = scalar_lea.hbm %s4491_s2, 256 }
  0x6a   : > { %p3484_p3 = scmp.lt.s32.totalorder %s3919_s14, %s4491_s2  ;;  %p3485_p7 = scmp.lt.s32.totalorder %s3483_s1, %s3478_s30 }
  0x6b   : > { %p3481_p1 = pnand %p3479_p13, %p3856_p11 }
  0x6c   : > { %p3486_p8 = por %p3485_p7, %p3484_p3 }
  0x6d   : > { %p3482_p2 = pneg %p3481_p1 }
  0x6f   : > { %p3487_p9 = pnand %p3486_p8, %p3482_p2 }
  0x71   : > { %3490 = shalt.err (!%p3487_p9)
}
  0x72   : > { %s3491_s9 = scalar_lea.vmem %s372_s27, 128  ;;  %s3675_s4 = smov [#allocation7]  }
  0x73   : > { %p3492_p10 = scmp.ne.s32.totalorder %s372_s27, %s3491_s9  ;;  %s3496_s15 = sshll.u32 %s3675_s4, 4  ;;  %s3497_s15 = int_to_ptr.vmem [resolvable:$false] %s3496_s15 }
  0x74   : > { %s3498_s19 = scalar_lea.vmem %s3497_s15, 256  ;;  %p3499_p4 = scmp.lt.s32.totalorder %s372_s27, %s3497_s15 }
  0x75   : > { %p3494_p5 = pnand %p3492_p10, %p3856_p11  ;;  %p3500_p0 = scmp.lt.s32.totalorder %s3498_s19, %s3491_s9 }
  0x77   : > { %p3495_p12 = pneg %p3494_p5  ;;  %p3501_p13 = por %p3500_p0, %p3499_p4 }
  0x79   : > { %p3502_p1 = pnand %p3501_p13, %p3495_p12 }
  0x7b   : > { %3505 = shalt.err (!%p3502_p1)
}
  0x7c   : > { %s4537_s16 = smov 16   ;;  %s3946_s26 = scalar_lea.hbm %s4492_s3, %s3837_s18 }
  0x7d   : > { %3198 = dma.hbm_to_vmem [thread:$0]  (!%p3829_p6), %s3919_s14, 128, %s372_s27, %s3850_s24, %s4537_s16, %s4537_s16, %s3673_s22  }
  0x7e   : > { %s385_s1 = scalar_lea.vmem [#allocation8], %s3834_s28  ;;  %s4538_s11 = sand.u32 1, %s3666_s12  }
  0x7f   : > { %s392_s7 = sshll.u32 %s385_s1, 4  ;;  %s382_s9 = scalar_lea.sflag [#allocation9], %s4538_s11  ;;  %s3949_s7 = int_to_ptr.vmem [resolvable:$true] %s392_s7 }
  0x80   : > { %s3506_s4 = scalar_lea.hbm %s3946_s26, 128  ;;  %s3511_s27 = scalar_lea.hbm %s4492_s3, 256 }
  0x81   : > { %p3507_p2 = scmp.ne.s32.totalorder %s3946_s26, %s3506_s4  ;;  %p3512_p8 = scmp.lt.s32.totalorder %s3946_s26, %s4492_s3 }
  0x82   : > { %p3513_p9 = scmp.lt.s32.totalorder %s3511_s27, %s3506_s4 }
  0x83   : > { %p3509_p3 = pnand %p3507_p2, %p3856_p11 }
  0x84   : > { %p3514_p10 = por %p3513_p9, %p3512_p8 }
  0x85   : > { %p3510_p7 = pneg %p3509_p3 }
  0x87   : > { %p3515_p5 = pnand %p3514_p10, %p3510_p7 }
  0x89   : > { %3518 = shalt.err (!%p3515_p5)
}
  0x8a   : > { %s3519_s28 = scalar_lea.vmem %s3949_s7, 128  ;;  %s3676_s19 = smov [#allocation8]  }
  0x8b   : > { %p3520_p12 = scmp.ne.s32.totalorder %s3949_s7, %s3519_s28  ;;  %s3524_s30 = sshll.u32 %s3676_s19, 4  ;;  %s3525_s30 = int_to_ptr.vmem [resolvable:$false] %s3524_s30 }
  0x8c   : > { %s3526_s25 = scalar_lea.vmem %s3525_s30, 256  ;;  %p3527_p13 = scmp.lt.s32.totalorder %s3949_s7, %s3525_s30 }
  0x8d   : > { %p3522_p4 = pnand %p3520_p12, %p3856_p11  ;;  %p3528_p1 = scmp.lt.s32.totalorder %s3526_s25, %s3519_s28 }
  0x8f   : > { %p3523_p0 = pneg %p3522_p4  ;;  %p3529_p2 = por %p3528_p1, %p3527_p13 }
  0x91   : > { %p3530_p3 = pnand %p3529_p2, %p3523_p0 }
  0x93   : > { %3533 = shalt.err (!%p3530_p3)
}
  0x94   : > { %3201 = dma.hbm_to_vmem [thread:$0]  (!%p3829_p6), %s3946_s26, 128, %s3949_s7, %s382_s9, %s4537_s16, %s4537_s16, %s3673_s22  }
  0x95   : > { %p4539_p11 = scmp.ne.s32.totalorder %s4528_s23, 0 }
  0x96   : > { %s3979_s17 = sand.u32 (!%p4539_p11), 1, %s3658_s10   ;;  %p4540_p7 = scmp.ne.s32.totalorder (!%p4539_p11), %s4524_s20, 0 }
  0x97   : > { %404 = sbr.rel (%p4539_p11) target bundleno = 1545 (0x609), region = 48  ;;  %s2811_s1 = sshll.u32 (!%p4539_p11), %s3979_s17, 7 }
  0x98   : > { %s407_s11 = scalar_lea.sflag (!%p4539_p11), [#allocation3], %s3979_s17  ;;  %s3983_s4 = scalar_lea.vmem (!%p4539_p11), [#allocation2], %s2811_s1 }
  0x9c   : > { %3629 = dma.done.wait (%p4540_p7), %s407_s11, 2048  }
  0x9d   : > { %3631 = vsyncadd (%p4540_p7), %s407_s11, 4294965248  ;;  %s3990_s23 = sand.u32 1, %s3756_s13   ;;  %s3993_s29 = sshll.u32 %s3979_s17, 3 }
  0x9e   : > { %s416_s22 = scalar_lea.sflag [#allocation6], %s3990_s23  ;;  %s3997_s16 = scalar_lea.vmem [#allocation5], %s3993_s29 }
  0x9f   : > { %3633 = dma.done.wait (%p4540_p7), %s416_s22, 256  }
  0xa0   : > { %3635 = vsyncadd (%p4540_p7), %s416_s22, 4294967040  ;;  %s4004_s26 = scalar_lea.vmem [#allocation7], %s3993_s29  ;;  %s434_s7 = scalar_lea.sflag [#allocation9], %s3990_s23 }
  0xa1   : > { %s4008_s9 = scalar_lea.vmem [#allocation8], %s3993_s29 }
  0xa2   : > { %3637 = dma.done.wait (%p4540_p7), %s434_s7, 128  }
  0xa3   : > { %3639 = vsyncadd (%p4540_p7), %s434_s7, 4294967168  ;;  %p4541_p6 = scmp.eq.s32.totalorder %s3756_s13, 0 }
  0xa5   : > { %3641 = dma.done.wait (%p4541_p6), [#allocation9], 1024   ;;  %p4542_p8 = pmov %p4541_p6 }
  0xa6   : > { %v3677_v0 = vmov 0   ;;  %v557_v1 = vld [vmem:[%s4008_s9] sm:$0x1]  ;;  %v3262_v4 = vld [vmem:[#allocation10 + $0x28] sm:$0xff]   ;;  %v3263_v5 = vld [vmem:[#allocation10 + $0x20] sm:$0xff]   ;;  %v3678_v26 = vmov 0.0  }
  0xa7   : > { %3643 = vsyncadd (%p4542_p8), [#allocation9], 4294966272  ;;  %3259 = vset.pattern.permute.xlu1 %v3677_v0  ;;  %886 = vxpose.xlu0.b32.start.end [1/1] (short) (narrow) %v557_v1, 32  ;;  %v3260_v2 = vld [vmem:[#allocation10 + $0x38] sm:$0xff]   ;;  %v3261_v3 = vld [vmem:[#allocation10 + $0x30] sm:$0xff]   ;;  %vm3679_vm0 = vmmov 0  }
  0xa8   : > { %2967 = vmatprep.subr.bf16.mxu0 %v3260_v2  ;;  %v4020_v6 = vld [vmem:[%s3983_s4] sm:$0xff]   ;;  %v3264_v8 = vld [vmem:[#allocation10 + $0x18] sm:$0xff]   ;;  %v3266_v10 = vld [vmem:[#allocation10 + $0x8] sm:$0xff]   ;;  %3015 = vmatprep.subr.mxu1 %v3678_v26  ;;  %vm2046_vm1 = vcmask 253952   ;;  %vm2151_vm2 = vcmask 261120   ;;  %s4266_s18 = scalar_lea.vmem [#allocation12], %s3993_s29 }
  0xa9   : > { %2968 = vmatpush3.bf16.msra.mxu0 %v3260_v2  ;;  %v558_v7 = vld [vmem:[%s4008_s9 + $0x1] sm:$0x1]  ;;  %2983 = vmatprep.mubr.bf16.mxu0 %v4020_v6  ;;  %v3267_v11 = vld [vmem:[#allocation10] sm:$0xff]   ;;  %v3271_v14 = vld [vmem:[%s3983_s4 + $0x18] sm:$0xff]   ;;  %s4276_s15 = scalar_lea.vmem [#allocation14], %s3993_s29  ;;  %s4360_s28 = scalar_lea.vmem [#allocation11], %s3993_s29 }
  0xaa   : > { %2969 = vmatprep.subr.bf16.mxu0 %v3261_v3  ;;  %v3265_v9 = vld [vmem:[#allocation10 + $0x10] sm:$0xff]   ;;  %v4025_v12 = vld [vmem:[%s3983_s4 + $0x8] sm:$0xff]   ;;  %v3270_v13 = vld [vmem:[%s3983_s4 + $0x10] sm:$0xff]   ;;  %3023 = vmatprep.mubr.msk.f32.mxu1 %vm3679_vm0, %v3678_v26  ;;  %s4366_s19 = sshll.u32 %s3756_s13, 7  ;;  %s2568_s11 = sshll.u32 %s4266_s18, 4  ;;  %s4375_s11 = int_to_ptr.vmem [resolvable:$true] %s2568_s11 }
  0xab   : > { %v4031_v15 = vld [vmem:[%s3983_s4 + $0x20] sm:$0xff]   ;;  %v4034_v16 = vld [vmem:[%s3983_s4 + $0x28] sm:$0xff]   ;;  %v3274_v19 = vld [vmem:[%s3983_s4 + $0x30] sm:$0xff]   ;;  %s4372_s1 = scalar_lea.hbm %s4497_s8, %s4366_s19  ;;  %s3534_s29 = scalar_lea.vmem %s4375_s11, 128 }
  0xac   : > { %v3275_v20 = vld [vmem:[%s3983_s4 + $0x38] sm:$0xff]   ;;  %v559_v28 = vld [vmem:[%s4008_s9 + $0x2] sm:$0x1]  ;;  %v560_v29 = vld [vmem:[%s4008_s9 + $0x3] sm:$0x1]  ;;  %p3535_p9 = scmp.ne.s32.totalorder %s4375_s11, %s3534_s29  ;;  %p4543_p10 = scmp.ne.s32.totalorder %s4525_s21, 0 }
  0xad   : > { %2970 = vmatpush3.bf16.msra.mxu0 %v3261_v3  ;;  %v562_v30 = vld [vmem:[%s4008_s9 + $0x5] sm:$0x1]  ;;  %v3278_v33 = vld [vmem:[%s3983_s4 + $0x50] sm:$0xff]   ;;  %v3279_v34 = vld [vmem:[%s3983_s4 + $0x58] sm:$0xff]   ;;  %s3680_s13 = smov [#allocation12]  }
  0xae   : > { %2971 = vmatprep.subr.bf16.mxu0 %v3262_v4  ;;  %v3276_v31 = vld [vmem:[%s3983_s4 + $0x40] sm:$0xff]   ;;  %v3277_v32 = vld [vmem:[%s3983_s4 + $0x48] sm:$0xff]   ;;  %p3536_p5 = pnand %p3535_p9, %p4543_p10  ;;  %s3538_s22 = sshll.u32 %s3680_s13, 4  ;;  %s3539_s22 = int_to_ptr.vmem [resolvable:$false] %s3538_s22 }
  0xaf   : > { %v563_v35 = vld [vmem:[%s4008_s9 + $0x6] sm:$0x1]  ;;  %v2843_v40 = vld [vmem:[%s3997_s16] ss:$0 sm:$0xff]  ;;  %p3541_p4 = scmp.lt.s32.totalorder %s4375_s11, %s3539_s22 }
  0xb0   : > { %v3280_v36 = vld [vmem:[%s3983_s4 + $0x60] sm:$0xff]   ;;  %p3537_p12 = pneg %p3536_p5 }
  0xb1   : > { %2972 = vmatpush3.bf16.msra.mxu0 %v3262_v4  ;;  %v4057_v43 = vld [vmem:[%s4494_s5] ss:$0 sm:$0xff] }
  0xb2   : > { %2973 = vmatprep.subr.bf16.mxu0 %v3263_v5 }
  0xb4   : > { %918 = vxpose.xlu0.b32.start.end [1/1] (short) (narrow) %v558_v7, 32 }
  0xb5   : > { %2974 = vmatpush3.bf16.msra.mxu0 %v3263_v5 }
  0xb6   : > { %2975 = vmatprep.subr.bf16.mxu0 %v3264_v8 }
  0xb9   : > { %2976 = vmatpush3.bf16.msra.mxu0 %v3264_v8 }
  0xba   : > { %2977 = vmatprep.subr.bf16.mxu0 %v3265_v9 }
  0xbd   : > { %2978 = vmatpush3.bf16.msra.mxu0 %v3265_v9 }
  0xbe   : > { %2979 = vmatprep.subr.bf16.mxu0 %v3266_v10 }
  0xc1   : > { %2980 = vmatpush3.bf16.msra.mxu0 %v3266_v10  ;;  %v3281_v10 = vld [vmem:[%s3983_s4 + $0x68] sm:$0xff]  }
  0xc2   : > { %2981 = vmatprep.subr.bf16.mxu0 %v3267_v11 }
  0xc5   : > { %2982 = vmatpush3.bf16.msra.mxu0 %v3267_v11 }
  0xc6   : > { %3070 = vmatprep.subr.mxu0 %v3678_v26 }
  0xc8   : > { %2984 = vmatmul.mubr.bf16.vlgmr.msra.gmra.mxu0 %v4025_v12 }
  0xc9   : > { %2987 = vmatprep.mubr.bf16.mxu0 %v3270_v13 }
  0xd0   : > { %2988 = vmatmul.mubr.bf16.gmra.mxu0 %v3271_v14 }
  0xd1   : > { %2991 = vmatprep.mubr.bf16.mxu0 %v4031_v15 }
  0xd8   : > { %2992 = vmatmul.mubr.bf16.gmra.mxu0 %v4034_v16 }
  0xd9   : > { %2995 = vmatprep.mubr.bf16.mxu0 %v3274_v19 }
  0xdd   : > { %3258 = vset.pattern.permute.xlu0 %v3677_v0  ;;  %v2844_v0 = vld [vmem:[%s3997_s16 + $0x1] ss:$0 sm:$0xff] }
  0xe0   : > { %2996 = vmatmul.mubr.bf16.gmra.mxu0 %v3275_v20  ;;  %v4070_v20 = vld [vmem:[%s3983_s4 + $0x70] sm:$0xff]  }
  0xe1   : > { %2999 = vmatprep.mubr.bf16.mxu0 %v3276_v31 }
  0xe8   : > { %3000 = vmatmul.mubr.bf16.gmra.mxu0 %v3277_v32 }
  0xe9   : > { %3003 = vmatprep.mubr.bf16.mxu0 %v3278_v33 }
  0xf0   : > { %3004 = vmatmul.mubr.bf16.gmra.mxu0 %v3279_v34 }
  0xf1   : > { %3007 = vmatprep.mubr.bf16.mxu0 %v3280_v36 }
  0xf8   : > { %3008 = vmatmul.mubr.bf16.gmra.mxu0 %v3281_v10 }
  0xf9   : > { %3011 = vmatprep.mubr.bf16.mxu0 %v4070_v20 }
 0x123   : > { %v902_v17 = vpop.trf.xlu0 }
 0x124   : > { %1225 = vperm.xlu0 %3258, %v902_v17  }
 0x127   : > { %v903_v18 = vpop.trf.xlu0 }
 0x128   : > { %1230 = vperm.xlu1 %3259, %v903_v18  }
 0x12b   : > { %v904_v21 = vpop.trf.xlu0 }
 0x12f   : > { %v905_v22 = vpop.trf.xlu0 }
 0x130   : > { %1240 = vperm.xlu1 %3259, %v905_v22  }
 0x133   : > { %v934_v23 = vpop.trf.xlu0 }
 0x134   : > { %1245 = vperm.xlu1 %3259, %v934_v23   ;;  %v4076_v23 = vld [vmem:[%s3983_s4 + $0x78] sm:$0xff]  }
 0x135   : > { %3012 = vmatmul.mubr.bf16.gmra.mxu0 %v4076_v23 }
 0x136   : > { %3078 = vmatprep.mubr.msk.f32.mxu0 %vm3679_vm0, %v3678_v26 }
 0x137   : > { %v935_v24 = vpop.trf.xlu0 }
 0x138   : > { %1250 = vperm.xlu0 %3258, %v935_v24  }
 0x13b   : > { %v936_v25 = vpop.trf.xlu0 }
 0x13c   : > { %1235 = vperm.xlu0 %3258, %v904_v21  }
 0x13f   : > { %v937_v27 = vpop.trf.xlu0 }
 0x140   : > { %1255 = vperm.xlu0 %3258, %v936_v25  }
 0x144   : > { %1260 = vperm.xlu0 %3258, %v937_v27  }
 0x15d   : > { %950 = vxpose.xlu1.b32.start.end [1/1] (short) (narrow) %v559_v28, 32  ;;  %v4085_v28 = vld [vmem:[%s4495_s6] sm:$0x1] }
 0x16a   : > { %982 = vxpose.xlu1.b32.start.end [1/1] (short) (narrow) %v560_v29, 32 }
 0x177   : > { %1046 = vxpose.xlu1.b32.start.end [1/1] (short) (narrow) %v562_v30, 32 }
 0x184   : > { %1078 = vxpose.xlu1.b32.start.end [1/1] (short) (narrow) %v563_v35, 32 }
 0x188   : > { %v2985_v37 = vpop.f32.mrf.mxu0 }
 0x189   : > { %v1192_v51 = vadd.f32 %v2985_v37, %v2843_v40 }
 0x18a   : > { %v759_v38 = vpop.f32.mrf.mxu0 }
 0x18b   : > { %v1190_v61 = vadd.f32 %v2843_v40, %v759_v38 }
 0x18c   : > { %v2986_v41 = vpop.f32.mrf.mxu0 }
 0x18d   : > { %v1193_v42 = vadd.f32 %v2986_v41, %v2843_v40  ;;  %v4103_v41 = vld [vmem:[%s4008_s9 + $0x7] sm:$0x1] }
 0x18e   : > { %v762_v48 = vpop.f32.mrf.mxu0 }
 0x18f   : > { %v1191_v54 = vadd.f32 %v2843_v40, %v762_v48  ;;  %v4099_v40 = vld [vmem:[%s4008_s9 + $0x4] sm:$0x1] }
 0x190   : > { %v2989_v50 = vpop.f32.mrf.mxu0 }
 0x191   : > { %v1196_v5 = vadd.f32 %v2989_v50, %v2844_v0 }
 0x192   : > { %v775_v56 = vpop.f32.mrf.mxu0 }
 0x193   : > { %v1194_v22 = vadd.f32 %v2844_v0, %v775_v56 }
 0x194   : > { %v2990_v59 = vpop.f32.mrf.mxu0 }
 0x195   : > { %v1197_v1 = vadd.f32 %v2990_v59, %v2844_v0 }
 0x196   : > { %v778_v9 = vpop.f32.mrf.mxu0 }
 0x197   : > { %v1195_v14 = vadd.f32 %v2844_v0, %v778_v9 }
 0x19f   : > { %v1226_v47 = vpop.permute.xlu0 %1225 }
 0x1a0   : > { %v1389_v60 = vmul.f32 %v4057_v43, %v1226_v47 }
 0x1a2   : > { %v1421_v3 = vadd.f32 %v1389_v60, %v1190_v61 }
 0x1a3   : > { %v1231_v39 = vpop.permute.xlu1 %1230 }
 0x1a4   : > { %v1390_v53 = vmul.f32 %v4057_v43, %v1231_v39 }
 0x1a6   : > { %v1422_v62 = vadd.f32 %v1390_v53, %v1191_v54 }
 0x1ab   : > { %v1241_v44 = vpop.permute.xlu1 %1240 }
 0x1ac   : > { %v1392_v45 = vmul.f32 %v4057_v43, %v1241_v44 }
 0x1ae   : > { %v1424_v46 = vadd.f32 %v1392_v45, %v1193_v42 }
 0x1af   : > { %v1246_v18 = vpop.permute.xlu1 %1245 }
 0x1b0   : > { %3284 = vtanh.f32 %v1424_v46  ;;  %v1393_v21 = vmul.f32 %v4057_v43, %v1246_v18 }
 0x1b2   : > { %v1425_v25 = vadd.f32 %v1393_v21, %v1194_v22 }
 0x1b3   : > { %v1251_v49 = vpop.permute.xlu0 %1250 }
 0x1b4   : > { %v1394_v11 = vmul.f32 %v4057_v43, %v1251_v49 }
 0x1b6   : > { %v1426_v19 = vadd.f32 %v1394_v11, %v1195_v14 }
 0x1b7   : > { %v1236_v52 = vpop.permute.xlu0 %1235 }
 0x1b8   : > { %v1391_v55 = vmul.f32 %v4057_v43, %v1236_v52  ;;  %v2993_v52 = vpop.f32.mrf.mxu0 }
 0x1ba   : > { %v1423_v57 = vadd.f32 %v1391_v55, %v1192_v51  ;;  %v791_v53 = vpop.f32.mrf.mxu0  ;;  %v2845_v55 = vld [vmem:[%s3997_s16 + $0x2] ss:$0 sm:$0xff] }
 0x1bb   : > { %v1256_v58 = vpop.permute.xlu0 %1255  ;;  %v1200_v60 = vadd.f32 %v2993_v52, %v2845_v55 }
 0x1bc   : > { %3286 = vtanh.f32 %v1423_v57  ;;  %v1395_v7 = vmul.f32 %v4057_v43, %v1256_v58  ;;  %v2994_v56 = vpop.f32.mrf.mxu0 }
 0x1bd   : > { %v3285_v63 = vpop.eup %3284  ;;  %3288 = vtanh.f32 %v1422_v62  ;;  %v1201_v57 = vadd.f32 %v2994_v56, %v2845_v55 }
 0x1be   : > { %3016 = vmatpush3.xpose.msra.mxu1 %v3285_v63  ;;  %3290 = vtanh.f32 %v1421_v3  ;;  %v1427_v13 = vadd.f32 %v1395_v7, %v1196_v5  ;;  %v794_v63 = vpop.f32.mrf.mxu0  ;;  %v1198_v5 = vadd.f32 %v2845_v55, %v791_v53  ;;  %v2848_v53 = vld [vmem:[%s3997_s16 + $0x5] ss:$0 sm:$0xff] }
 0x1bf   : > { %v1261_v2 = vpop.permute.xlu0 %1260  ;;  %3017 = vmatprep.subr.mxu1 %v3678_v26  ;;  %v1199_v3 = vadd.f32 %v2845_v55, %v794_v63 }
 0x1c0   : > { %v1396_v4 = vmul.f32 %v4057_v43, %v1261_v2 }
 0x1c2   : > { %v1428_v8 = vadd.f32 %v1396_v4, %v1197_v1 }
 0x1c4   : > { %3292 = vtanh.f32 %v1428_v8 }
 0x1c5   : > { %3294 = vtanh.f32 %v1427_v13 }
 0x1c6   : > { %3296 = vtanh.f32 %v1426_v19 }
 0x1c7   : > { %3298 = vtanh.f32 %v1425_v25 }
 0x1c9   : > { %v3287_v17 = vpop.eup %3286 }
 0x1ca   : > { %3018 = vmatpush3.xpose.msra.mxu1 %v3287_v17  ;;  %v3289_v24 = vpop.eup %3288 }
 0x1cb   : > { %3019 = vmatprep.subr.mxu1 %v3678_v26  ;;  %v3291_v27 = vpop.eup %3290 }
 0x1ce   : > { %3020 = vmatpush3.xpose.msra.mxu1 %v3289_v24 }
 0x1cf   : > { %3021 = vmatprep.subr.mxu1 %v3678_v26 }
 0x1d1   : > { %v3293_v29 = vpop.eup %3292 }
 0x1d2   : > { %3022 = vmatpush3.xpose.msra.mxu1 %v3291_v27  ;;  %v3295_v30 = vpop.eup %3294  ;;  %v2997_v27 = vpop.f32.mrf.mxu0 }
 0x1d3   : > { %3026 = vmatprep.subr.mxu1 %v3678_v26  ;;  %v3297_v32 = vpop.eup %3296 }
 0x1d4   : > { %v3299_v34 = vpop.eup %3298 }
 0x1d5   : > { %3024 = vmatmul.mubr.f32.vlgmr.msra.gmra.mxu1 %v4085_v28 }
 0x1d6   : > { %3027 = vmatpush3.xpose.msra.mxu1 %v3293_v29  ;;  %3034 = vmatprep.mubr.msk.f32.mxu1 %vm3679_vm0, %v3678_v26 }
 0x1d7   : > { %3028 = vmatprep.subr.mxu1 %v3678_v26 }
 0x1d9   : > { %v966_v31 = vpop.trf.xlu1 }
 0x1da   : > { %3029 = vmatpush3.xpose.msra.mxu1 %v3295_v30  ;;  %v807_v30 = vpop.f32.mrf.mxu0 }
 0x1db   : > { %3030 = vmatprep.subr.mxu1 %v3678_v26 }
 0x1dd   : > { %v967_v33 = vpop.trf.xlu1 }
 0x1de   : > { %3031 = vmatpush3.xpose.msra.mxu1 %v3297_v32  ;;  %v2998_v32 = vpop.f32.mrf.mxu0 }
 0x1df   : > { %3032 = vmatprep.subr.mxu1 %v3678_v26 }
 0x1e1   : > { %v968_v35 = vpop.trf.xlu1 }
 0x1e2   : > { %1275 = vperm.xlu1 %3259, %v968_v35   ;;  %3033 = vmatpush3.xpose.msra.mxu1 %v3299_v34  ;;  %v810_v34 = vpop.f32.mrf.mxu0 }
 0x1e3   : > { %3037 = vmatprep.subr.mxu1 %v3678_v26 }
 0x1e4   : > { %v4126_v35 = vpop.f32.mrf.mxu0 }
 0x1e5   : > { %v969_v36 = vpop.trf.xlu1  ;;  %3035 = vmatmul.mubr.f32.vlgmr.msra.gmra.mxu1 %v4085_v28 }
 0x1e6   : > { %1270 = vperm.xlu1 %3259, %v967_v33   ;;  %1280 = vperm.xlu0 %3258, %v969_v36   ;;  %v4128_v36 = vpop.f32.mrf.mxu0 }
 0x1e7   : > { %3045 = vmatprep.mubr.msk.f32.mxu1 %vm3679_vm0, %v3678_v26 }
 0x1e9   : > { %v998_v37 = vpop.trf.xlu1 }
 0x1ea   : > { %1265 = vperm.xlu1 %3259, %v966_v31  }
 0x1ed   : > { %v999_v38 = vpop.trf.xlu1 }
 0x1f1   : > { %v1000_v39 = vpop.trf.xlu1 }
 0x1f2   : > { %1295 = vperm.xlu1 %3259, %v1000_v39  }
 0x1f5   : > { %v1001_v42 = vpop.trf.xlu1 }
 0x1f6   : > { %1290 = vperm.xlu1 %3259, %v999_v38   ;;  %v4132_v38 = vpop.f32.mrf.mxu0 }
 0x1f9   : > { %v1062_v44 = vpop.trf.xlu1 }
 0x1fa   : > { %1285 = vperm.xlu1 %3259, %v998_v37  }
 0x1fd   : > { %v1063_v45 = vpop.trf.xlu1 }
 0x201   : > { %v1064_v46 = vpop.trf.xlu1 }
 0x204   : > { %1014 = vxpose.xlu0.b32.start.end [1/1] (short) (narrow) %v4099_v40, 32 }
 0x205   : > { %v1065_v47 = vpop.trf.xlu1 }
 0x209   : > { %v4106_v48 = vpop.trf.xlu1 }
 0x20d   : > { %v4108_v49 = vpop.trf.xlu1 }
 0x211   : > { %1110 = vxpose.xlu0.b32.start.end [1/1] (short) (narrow) %v4103_v41, 32  ;;  %v1096_v50 = vpop.trf.xlu1 }
 0x215   : > { %v1097_v51 = vpop.trf.xlu1 }
 0x246   : > { %1300 = vperm.xlu0 %3258, %v1001_v42   ;;  %v4134_v42 = vpop.f32.mrf.mxu0 }
 0x24a   : > { %1340 = vperm.xlu0 %3258, %v1065_v47   ;;  %v2846_v47 = vld [vmem:[%s3997_s16 + $0x3] ss:$0 sm:$0xff] }
 0x24e   : > { %1335 = vperm.xlu0 %3258, %v1064_v46  }
 0x252   : > { %1330 = vperm.xlu0 %3258, %v1063_v45  }
 0x256   : > { %1325 = vperm.xlu0 %3258, %v1062_v44   ;;  %v3005_v44 = vpop.f32.mrf.mxu0 }
 0x258   : > { %v839_v46 = vpop.f32.mrf.mxu0 }
 0x25d   : > { %v1276_v54 = vpop.permute.xlu1 %1275 }
 0x25e   : > { %v1399_v61 = vmul.f32 %v4057_v43, %v1276_v54  ;;  %v3006_v54 = vpop.f32.mrf.mxu0 }
 0x260   : > { %v1431_v1 = vadd.f32 %v1399_v61, %v1200_v60  ;;  %v1203_v60 = vadd.f32 %v2846_v47, %v810_v34 }
 0x261   : > { %v1271_v58 = vpop.permute.xlu1 %1270  ;;  %v1281_v59 = vpop.permute.xlu0 %1280 }
 0x262   : > { %v1400_v62 = vmul.f32 %v4057_v43, %v1281_v59  ;;  %v1398_v2 = vmul.f32 %v4057_v43, %v1271_v58 }
 0x264   : > { %v1432_v0 = vadd.f32 %v1400_v62, %v1201_v57  ;;  %v1430_v7 = vadd.f32 %v1398_v2, %v1199_v3  ;;  %v1213_v57 = vadd.f32 %v3006_v54, %v2848_v53  ;;  %v1202_v3 = vadd.f32 %v2846_v47, %v807_v30 }
 0x265   : > { %v1266_v4 = vpop.permute.xlu1 %1265 }
 0x266   : > { %3300 = vtanh.f32 %v1432_v0  ;;  %v1397_v8 = vmul.f32 %v4057_v43, %v1266_v4 }
 0x267   : > { %3302 = vtanh.f32 %v1431_v1  ;;  %v1212_v1 = vadd.f32 %v3005_v44, %v2848_v53 }
 0x268   : > { %3304 = vtanh.f32 %v1430_v7  ;;  %v1429_v9 = vadd.f32 %v1397_v8, %v1198_v5  ;;  %v842_v8 = vpop.f32.mrf.mxu0 }
 0x26a   : > { %3306 = vtanh.f32 %v1429_v9 }
 0x26d   : > { %v1296_v45 = vpop.permute.xlu1 %1295 }
 0x273   : > { %v3301_v10 = vpop.eup %3300 }
 0x274   : > { %3038 = vmatpush3.xpose.msra.mxu1 %v3301_v10  ;;  %v3303_v11 = vpop.eup %3302 }
 0x275   : > { %3039 = vmatprep.subr.mxu1 %v3678_v26  ;;  %v3305_v13 = vpop.eup %3304 }
 0x277   : > { %v3307_v14 = vpop.eup %3306 }
 0x278   : > { %3040 = vmatpush3.xpose.msra.mxu1 %v3303_v11 }
 0x279   : > { %3041 = vmatprep.subr.mxu1 %v3678_v26 }
 0x27c   : > { %3042 = vmatpush3.xpose.msra.mxu1 %v3305_v13  ;;  %v1211_v13 = vadd.f32 %v2848_v53, %v842_v8 }
 0x27d   : > { %3043 = vmatprep.subr.mxu1 %v3678_v26 }
 0x280   : > { %v1030_v17 = vpop.trf.xlu0  ;;  %3044 = vmatpush3.xpose.msra.mxu1 %v3307_v14 }
 0x281   : > { %3048 = vmatprep.subr.mxu1 %v3678_v26 }
 0x283   : > { %3046 = vmatmul.mubr.f32.vlgmr.msra.gmra.mxu1 %v4085_v28 }
 0x284   : > { %v1031_v18 = vpop.trf.xlu0  ;;  %3056 = vmatprep.mubr.msk.f32.mxu1 %vm3679_vm0, %v3678_v26 }
 0x288   : > { %v1032_v19 = vpop.trf.xlu0 }
 0x28c   : > { %v1033_v21 = vpop.trf.xlu0 }
 0x28d   : > { %1320 = vperm.xlu1 %3259, %v1033_v21  }
 0x290   : > { %v1126_v22 = vpop.trf.xlu0 }
 0x291   : > { %1315 = vperm.xlu1 %3259, %v1032_v19   ;;  %v1210_v19 = vadd.f32 %v2848_v53, %v839_v46 }
 0x294   : > { %v1127_v24 = vpop.trf.xlu0 }
 0x295   : > { %1310 = vperm.xlu1 %3259, %v1031_v18   ;;  %v4122_v31 = vpop.f32.mrf.mxu1 }
 0x296   : > { %v2047_v10 = vsel %vm2046_vm1, %v4122_v31, -inf }
 0x297   : > { %v3025_v33 = vpop.f32.mrf.mxu1 }
 0x298   : > { %v1128_v25 = vpop.trf.xlu0 }
 0x299   : > { %1305 = vperm.xlu1 %3259, %v1030_v17  }
 0x29c   : > { %v1129_v29 = vpop.trf.xlu0 }
 0x29d   : > { %1360 = vperm.xlu1 %3259, %v1097_v51   ;;  %1380 = vperm.xlu0 %3258, %v1129_v29   ;;  %v1403_v51 = vmul.f32 %v4057_v43, %v1296_v45  ;;  %v3009_v45 = vpop.f32.mrf.mxu0 }
 0x29f   : > { %v4164_v46 = vpop.f32.mrf.mxu0 }
 0x2a1   : > { %1355 = vperm.xlu1 %3259, %v1096_v50   ;;  %1375 = vperm.xlu0 %3258, %v1128_v25   ;;  %v1291_v50 = vpop.permute.xlu1 %1290 }
 0x2a2   : > { %v1402_v59 = vmul.f32 %v4057_v43, %v1291_v50 }
 0x2a4   : > { %v1434_v4 = vadd.f32 %v1402_v59, %v1203_v60 }
 0x2a5   : > { %1350 = vperm.xlu1 %3259, %v4108_v49   ;;  %1370 = vperm.xlu0 %3258, %v1127_v24   ;;  %v4130_v37 = vpop.f32.mrf.mxu1  ;;  %v1205_v49 = vadd.f32 %v2998_v32, %v2846_v47  ;;  %v1286_v63 = vpop.permute.xlu1 %1285 }
 0x2a6   : > { %v2050_v62 = vsel %vm2046_vm1, %v4130_v37, -inf  ;;  %v1401_v5 = vmul.f32 %v4057_v43, %v1286_v63 }
 0x2a7   : > { %v3036_v39 = vpop.f32.mrf.mxu1 }
 0x2a8   : > { %v1433_v14 = vadd.f32 %v1401_v5, %v1202_v3 }
 0x2a9   : > { %1345 = vperm.xlu1 %3259, %v4106_v48   ;;  %1365 = vperm.xlu0 %3258, %v1126_v22   ;;  %v1204_v48 = vadd.f32 %v2997_v27, %v2846_v47  ;;  %v2847_v47 = vld [vmem:[%s3997_s16 + $0x4] ss:$0 sm:$0xff] }
 0x2aa   : > { %v1207_v60 = vadd.f32 %v2847_v47, %v4134_v42 }
 0x2ab   : > { %v1435_v58 = vadd.f32 %v1403_v51, %v1204_v48  ;;  %v1209_v48 = vadd.f32 %v4132_v38, %v2847_v47 }
 0x2c1   : > { %v1301_v52 = vpop.permute.xlu0 %1300 }
 0x2c2   : > { %v1404_v55 = vmul.f32 %v4057_v43, %v1301_v52 }
 0x2c4   : > { %v1436_v56 = vadd.f32 %v1404_v55, %v1205_v49  ;;  %v3010_v49 = vpop.f32.mrf.mxu0  ;;  %v1208_v55 = vadd.f32 %v4126_v35, %v2847_v47 }
 0x2c5   : > { %v1341_v61 = vpop.permute.xlu0 %1340 }
 0x2c6   : > { %3308 = vtanh.f32 %v1436_v56  ;;  %v1412_v0 = vmul.f32 %v4057_v43, %v1341_v61  ;;  %v858_v53 = vpop.f32.mrf.mxu0 }
 0x2c7   : > { %3310 = vtanh.f32 %v1435_v58 }
 0x2c8   : > { %v1444_v2 = vadd.f32 %v1412_v0, %v1213_v57  ;;  %2051 = vmax.xlane.f32.xlu0 %v2050_v62  ;;  %v3013_v58 = vpop.f32.mrf.mxu0  ;;  %v1206_v0 = vadd.f32 %v2847_v47, %v4128_v36 }
 0x2c9   : > { %v1336_v7 = vpop.permute.xlu0 %1335 }
 0x2ca   : > { %3312 = vtanh.f32 %v1444_v2  ;;  %v1411_v9 = vmul.f32 %v4057_v43, %v1336_v7  ;;  %v871_v62 = vpop.f32.mrf.mxu0  ;;  %v2850_v2 = vld [vmem:[%s3997_s16 + $0x7] ss:$0 sm:$0xff] }
 0x2cb   : > { %3314 = vtanh.f32 %v1434_v4 }
 0x2cc   : > { %v1443_v11 = vadd.f32 %v1411_v9, %v1212_v1  ;;  %v2849_v1 = vld [vmem:[%s3997_s16 + $0x6] ss:$0 sm:$0xff]  ;;  %v3014_v3 = vpop.f32.mrf.mxu0  ;;  %s3540_s16 = scalar_lea.vmem %s3539_s22, 256 }
 0x2cd   : > { %v1331_v17 = vpop.permute.xlu0 %1330  ;;  %2048 = vmax.xlane.f32.xlu1 %v2047_v10  ;;  %v1217_v5 = vadd.f32 %v3010_v49, %v2849_v1  ;;  %v1221_v9 = vadd.f32 %v3014_v3, %v2850_v2  ;;  %v1216_v36 = vadd.f32 %v3009_v45, %v2849_v1  ;;  %p3542_p0 = scmp.lt.s32.totalorder %s3540_s16, %s3534_s29 }
 0x2ce   : > { %3316 = vtanh.f32 %v1443_v11  ;;  %v1410_v18 = vmul.f32 %v4057_v43, %v1331_v17 }
 0x2cf   : > { %3318 = vtanh.f32 %v1433_v14  ;;  %p3543_p13 = por %p3542_p0, %p3541_p4 }
 0x2d0   : > { %v1442_v21 = vadd.f32 %v1410_v18, %v1211_v13 }
 0x2d1   : > { %v1326_v22 = vpop.permute.xlu0 %1325  ;;  %p3544_p1 = pnand %p3543_p13, %p3537_p12 }
 0x2d2   : > { %3320 = vtanh.f32 %v1442_v21  ;;  %v1409_v24 = vmul.f32 %v4057_v43, %v1326_v22 }
 0x2d3   : > { %v3309_v25 = vpop.eup %3308 }
 0x2d4   : > { %v1441_v27 = vadd.f32 %v1409_v24, %v1210_v19  ;;  %3049 = vmatpush3.xpose.msra.mxu1 %v3309_v25  ;;  %v3311_v29 = vpop.eup %3310  ;;  %v1220_v19 = vadd.f32 %v3013_v58, %v2850_v2  ;;  %v874_v25 = vpop.f32.mrf.mxu0 }
 0x2d5   : > { %3050 = vmatprep.subr.mxu1 %v3678_v26 }
 0x2d6   : > { %3322 = vtanh.f32 %v1441_v27 }
 0x2d7   : > { %v3313_v30 = vpop.eup %3312 }
 0x2d8   : > { %3051 = vmatpush3.xpose.msra.mxu1 %v3311_v29  ;;  %3071 = vmatpush3.xpose.msra.mxu0 %v3313_v30  ;;  %v3315_v32 = vpop.eup %3314  ;;  %v1215_v30 = vadd.f32 %v2849_v1, %v858_v53 }
 0x2d9   : > { %3052 = vmatprep.subr.mxu1 %v3678_v26  ;;  %3072 = vmatprep.subr.mxu0 %v3678_v26 }
 0x2db   : > { %v3317_v33 = vpop.eup %3316 }
 0x2dc   : > { %3053 = vmatpush3.xpose.msra.mxu1 %v3315_v32  ;;  %3073 = vmatpush3.xpose.msra.mxu0 %v3317_v33  ;;  %v3319_v34 = vpop.eup %3318 }
 0x2dd   : > { %3054 = vmatprep.subr.mxu1 %v3678_v26  ;;  %3074 = vmatprep.subr.mxu0 %v3678_v26 }
 0x2df   : > { %v3321_v39 = vpop.eup %3320 }
 0x2e0   : > { %3055 = vmatpush3.xpose.msra.mxu1 %v3319_v34  ;;  %3075 = vmatpush3.xpose.msra.mxu0 %v3321_v39  ;;  %v1219_v34 = vadd.f32 %v2850_v2, %v874_v25 }
 0x2e1   : > { %3076 = vmatprep.subr.mxu0 %v3678_v26  ;;  %3059 = vmatprep.subr.mxu1 %v3678_v26 }
 0x2e3   : > { %v3323_v44 = vpop.eup %3322  ;;  %3057 = vmatmul.mubr.f32.vlgmr.msra.gmra.mxu1 %v4085_v28 }
 0x2e4   : > { %3077 = vmatpush3.xpose.msra.mxu0 %v3323_v44  ;;  %3067 = vmatprep.mubr.msk.f32.mxu1 %vm3679_vm0, %v3678_v26 }
 0x2e5   : > { %3092 = vmatprep.subr.mxu0 %v3678_v26 }
 0x2e7   : > { %3079 = vmatmul.mubr.f32.vlgmr.msra.gmra.mxu0 %v4085_v28 }
 0x2e8   : > { %3100 = vmatprep.mubr.msk.f32.mxu0 %vm3679_vm0, %v3678_v26 }
 0x308   : > { %v1321_v50 = vpop.permute.xlu1 %1320 }
 0x309   : > { %v1408_v51 = vmul.f32 %v4057_v43, %v1321_v50  ;;  %v1214_v50 = vadd.f32 %v2849_v1, %v4164_v46 }
 0x30b   : > { %v1440_v52 = vadd.f32 %v1408_v51, %v1209_v48 }
 0x30c   : > { %v1316_v54 = vpop.permute.xlu1 %1315 }
 0x30d   : > { %3324 = vtanh.f32 %v1440_v52  ;;  %v1407_v56 = vmul.f32 %v4057_v43, %v1316_v54  ;;  %v1218_v52 = vadd.f32 %v2850_v2, %v871_v62 }
 0x30f   : > { %v1439_v57 = vadd.f32 %v1407_v56, %v1208_v55 }
 0x310   : > { %v1311_v59 = vpop.permute.xlu1 %1310 }
 0x311   : > { %3326 = vtanh.f32 %v1439_v57  ;;  %v1406_v38 = vmul.f32 %v4057_v43, %v1311_v59 }
 0x313   : > { %v1438_v61 = vadd.f32 %v1406_v38, %v1207_v60 }
 0x314   : > { %v1306_v63 = vpop.permute.xlu1 %1305 }
 0x315   : > { %3328 = vtanh.f32 %v1438_v61  ;;  %v1405_v35 = vmul.f32 %v4057_v43, %v1306_v63 }
 0x317   : > { %v1437_v4 = vadd.f32 %v1405_v35, %v1206_v0 }
 0x318   : > { %v1361_v7 = vpop.permute.xlu1 %1360  ;;  %v1381_v8 = vpop.permute.xlu0 %1380 }
 0x319   : > { %3330 = vtanh.f32 %v1437_v4  ;;  %v1416_v42 = vmul.f32 %v4057_v43, %v1361_v7  ;;  %v1420_v10 = vmul.f32 %v4057_v43, %v1381_v8 }
 0x31a   : > { %v3325_v11 = vpop.eup %3324 }
 0x31b   : > { %v1448_v13 = vadd.f32 %v1416_v42, %v1217_v5  ;;  %v1452_v14 = vadd.f32 %v1420_v10, %v1221_v9  ;;  %3060 = vmatpush3.xpose.msra.mxu1 %v3325_v11 }
 0x31c   : > { %v1356_v17 = vpop.permute.xlu1 %1355  ;;  %v1376_v18 = vpop.permute.xlu0 %1375  ;;  %3061 = vmatprep.subr.mxu1 %v3678_v26 }
 0x31d   : > { %3332 = vtanh.f32 %v1448_v13  ;;  %v1415_v21 = vmul.f32 %v4057_v43, %v1356_v17  ;;  %v1419_v22 = vmul.f32 %v4057_v43, %v1376_v18  ;;  %v549_v17 = vld [vmem:[%s4004_s26] sm:$0x1]  ;;  %v550_v18 = vld [vmem:[%s4004_s26 + $0x1] sm:$0x1] }
 0x31e   : > { %v3327_v24 = vpop.eup %3326  ;;  %3334 = vtanh.f32 %v1452_v14 }
 0x31f   : > { %v1447_v27 = vadd.f32 %v1415_v21, %v1216_v36  ;;  %v1451_v29 = vadd.f32 %v1419_v22, %v1220_v19  ;;  %3062 = vmatpush3.xpose.msra.mxu1 %v3327_v24 }
 0x320   : > { %v1351_v32 = vpop.permute.xlu1 %1350  ;;  %v1371_v33 = vpop.permute.xlu0 %1370  ;;  %3063 = vmatprep.subr.mxu1 %v3678_v26 }
 0x321   : > { %3336 = vtanh.f32 %v1447_v27  ;;  %v1414_v39 = vmul.f32 %v4057_v43, %v1351_v32  ;;  %v1418_v44 = vmul.f32 %v4057_v43, %v1371_v33 }
 0x322   : > { %v3329_v45 = vpop.eup %3328  ;;  %3338 = vtanh.f32 %v1451_v29 }
 0x323   : > { %v1446_v47 = vadd.f32 %v1414_v39, %v1215_v30  ;;  %v1450_v49 = vadd.f32 %v1418_v44, %v1219_v34  ;;  %3064 = vmatpush3.xpose.msra.mxu1 %v3329_v45  ;;  %v551_v30 = vld [vmem:[%s4004_s26 + $0x2] sm:$0x1] }
 0x324   : > { %v1346_v48 = vpop.permute.xlu1 %1345  ;;  %v1366_v51 = vpop.permute.xlu0 %1365  ;;  %3065 = vmatprep.subr.mxu1 %v3678_v26 }
 0x325   : > { %3340 = vtanh.f32 %v1446_v47  ;;  %v1413_v53 = vmul.f32 %v4057_v43, %v1346_v48  ;;  %v1417_v54 = vmul.f32 %v4057_v43, %v1366_v51 }
 0x326   : > { %v3331_v55 = vpop.eup %3330  ;;  %3342 = vtanh.f32 %v1450_v49 }
 0x327   : > { %v1445_v56 = vadd.f32 %v1413_v53, %v1214_v50  ;;  %v1449_v57 = vadd.f32 %v1417_v54, %v1218_v52  ;;  %3066 = vmatpush3.xpose.msra.mxu1 %v3331_v55  ;;  %v552_v52 = vld [vmem:[%s4004_s26 + $0x3] sm:$0x1]  ;;  %v554_v55 = vld [vmem:[%s4004_s26 + $0x5] sm:$0x1] }
 0x328   : > { %3081 = vmatprep.subr.mxu1 %v3678_v26 }
 0x329   : > { %3344 = vtanh.f32 %v1445_v56 }
 0x32a   : > { %v3333_v58 = vpop.eup %3332  ;;  %3346 = vtanh.f32 %v1449_v57  ;;  %3068 = vmatmul.mubr.f32.vlgmr.msra.gmra.mxu1 %v4085_v28 }
 0x32b   : > { %v3335_v46 = vpop.eup %3334  ;;  %3082 = vmatpush3.xpose.msra.mxu1 %v3333_v58  ;;  %3089 = vmatprep.mubr.msk.f32.mxu1 %vm3679_vm0, %v3678_v26 }
 0x32c   : > { %3093 = vmatpush3.xpose.msra.mxu0 %v3335_v46  ;;  %3083 = vmatprep.subr.mxu1 %v3678_v26 }
 0x32d   : > { %3094 = vmatprep.subr.mxu0 %v3678_v26 }
 0x32e   : > { %v3337_v43 = vpop.eup %3336 }
 0x32f   : > { %v3339_v59 = vpop.eup %3338  ;;  %3084 = vmatpush3.xpose.msra.mxu1 %v3337_v43 }
 0x330   : > { %3095 = vmatpush3.xpose.msra.mxu0 %v3339_v59  ;;  %3085 = vmatprep.subr.mxu1 %v3678_v26 }
 0x331   : > { %3096 = vmatprep.subr.mxu0 %v3678_v26 }
 0x332   : > { %v3341_v60 = vpop.eup %3340 }
 0x333   : > { %v3343_v38 = vpop.eup %3342  ;;  %3086 = vmatpush3.xpose.msra.mxu1 %v3341_v60 }
 0x334   : > { %3097 = vmatpush3.xpose.msra.mxu0 %v3343_v38  ;;  %3087 = vmatprep.subr.mxu1 %v3678_v26 }
 0x335   : > { %3098 = vmatprep.subr.mxu0 %v3678_v26 }
 0x336   : > { %v3345_v61 = vpop.eup %3344 }
 0x337   : > { %v3347_v62 = vpop.eup %3346  ;;  %3088 = vmatpush3.xpose.msra.mxu1 %v3345_v61  ;;  %v553_v61 = vld [vmem:[%s4004_s26 + $0x4] sm:$0x1] }
 0x338   : > { %3099 = vmatpush3.xpose.msra.mxu0 %v3347_v62  ;;  %3103 = vmatprep.subr.bf16.mxu1 %v3678_v26 }
 0x339   : > { %3119 = vmatprep.subr.bf16.mxu0 %v3678_v26 }
 0x33a   : > { %3090 = vmatmul.mubr.f32.vlgmr.msra.gmra.mxu1 %v4085_v28 }
 0x33b   : > { %3101 = vmatmul.mubr.f32.vlgmr.msra.gmra.mxu0 %v4085_v28  ;;  %3104 = vmatpush3.bf16.msra.mxu1 %v4025_v12 }
 0x33c   : > { %3105 = vmatprep.subr.bf16.mxu1 %v3678_v26  ;;  %3120 = vmatpush3.bf16.msra.mxu0 %v4034_v16 }
 0x33d   : > { %3107 = vmatprep.mubr.msk.bf16.mxu1 %vm3679_vm0, %v3678_v26  ;;  %3121 = vmatprep.subr.bf16.mxu0 %v3678_v26 }
 0x33e   : > { %3123 = vmatprep.mubr.msk.bf16.mxu0 %vm3679_vm0, %v3678_v26 }
 0x33f   : > { %3106 = vmatpush3.bf16.msra.mxu1 %v4020_v6 }
 0x340   : > { %3111 = vmatprep.subr.bf16.mxu1 %v3678_v26  ;;  %3122 = vmatpush3.bf16.msra.mxu0 %v4031_v15 }
 0x341   : > { %3135 = vmatprep.subr.bf16.mxu0 %v3678_v26 }
 0x343   : > { %v1692_v12 = vpop.f32.mrf.mxu1 }
 0x344   : > { %v2053_v28 = vsel %vm2046_vm1, %v1692_v12, -inf }
 0x345   : > { %2054 = vmax.xlane.f32.xlu0 %v2053_v28  ;;  %v3047_v16 = vpop.f32.mrf.mxu1 }
 0x351   : > { %v2052_v4 = vpop.xlane.xlu0 %2051 }
 0x352   : > { %v2072_v5 = vsub.f32 %v4130_v37, %v2052_v4  ;;  %v555_v4 = vld [vmem:[%s4004_s26 + $0x6] sm:$0x1] }
 0x354   : > { %v2081_v42 = vmul.f32 1.442695, %v2072_v5 }
 0x356   : > { %v2049_v3 = vpop.xlane.xlu1 %2048 }
 0x357   : > { %v2071_v15 = vsub.f32 %v4122_v31, %v2049_v3 }
 0x359   : > { %v2079_v8 = vmul.f32 1.442695, %v2071_v15  ;;  %v556_v15 = vld [vmem:[%s4004_s26 + $0x7] sm:$0x1] }
 0x35b   : > { %3348 = vpow2.f32 %v2079_v8 }
 0x35c   : > { %3350 = vpow2.f32 %v2081_v42 }
 0x368   : > { %v3349_v36 = vpop.eup %3348 }
 0x369   : > { %v3351_v31 = vpop.eup %3350  ;;  %v4224_v22 = vmul.f32 %v3349_v36, %v549_v17 }
 0x36a   : > { %v4227_v29 = vmul.f32 %v3351_v31, %v550_v18  ;;  %v3380_v31 = vld [vmem:[%s4008_s9] sm:$0x1] }
 0x36b   : > { %v2103_v33 = vsel %vm2046_vm1, %v4224_v22, 0.0 }
 0x36c   : > { %v2106_v39 = vsel %vm2046_vm1, %v4227_v29, 0.0 }
 0x3a3   : > { %v1762_v63 = vpop.f32.mrf.mxu1 }
 0x3a4   : > { %v2056_v0 = vsel %vm2046_vm1, %v1762_v63, -inf }
 0x3a5   : > { %2057 = vmax.xlane.f32.xlu1 %v2056_v0  ;;  %v3058_v1 = vpop.f32.mrf.mxu1 }
 0x3a7   : > { %v1902_v35 = vpop.f32.mrf.mxu0 }
 0x3a8   : > { %v2062_v2 = vsel %vm2046_vm1, %v1902_v35, -inf }
 0x3a9   : > { %2063 = vmax.xlane.f32.xlu1 %v2062_v2  ;;  %v3080_v6 = vpop.f32.mrf.mxu0 }
 0x3ce   : > { %v2055_v7 = vpop.xlane.xlu0 %2054 }
 0x3cf   : > { %v2073_v9 = vsub.f32 %v1692_v12, %v2055_v7 }
 0x3d1   : > { %v2083_v11 = vmul.f32 1.442695, %v2073_v9 }
 0x3d3   : > { %3352 = vpow2.f32 %v2083_v11 }
 0x3e0   : > { %v3353_v24 = vpop.eup %3352 }
 0x3e1   : > { %v4232_v34 = vmul.f32 %v3353_v24, %v551_v30  ;;  %v3382_v24 = vld [vmem:[%s4008_s9 + $0x2] sm:$0x1] }
 0x3e2   : > { %v3384_v30 = vld [vmem:[%s3983_s4 + $0x48] sm:$0xff]  }
 0x3e3   : > { %v2109_v44 = vsel %vm2046_vm1, %v4232_v34, 0.0 }
 0x3ea   : > { %v1832_v10 = vpop.f32.mrf.mxu1 }
 0x3eb   : > { %v2059_v13 = vsel %vm2046_vm1, %v1832_v10, -inf }
 0x3ec   : > { %2060 = vmax.xlane.f32.xlu0 %v2059_v13  ;;  %v3069_v14 = vpop.f32.mrf.mxu1 }
 0x3fa   : > { %v1972_v37 = vpop.f32.mrf.mxu1 }
 0x3fb   : > { %v2042_v19 = vpop.f32.mrf.mxu0  ;;  %v2065_v21 = vsel %vm2046_vm1, %v1972_v37, -inf }
 0x3fc   : > { %2066 = vmax.xlane.f32.xlu0 %v2065_v21  ;;  %v3091_v25 = vpop.f32.mrf.mxu1  ;;  %v2068_v27 = vsel %vm2046_vm1, %v2042_v19, -inf  ;;  %v3381_v21 = vld [vmem:[%s4008_s9 + $0x1] sm:$0x1] }
 0x3fd   : > { %2069 = vmax.xlane.f32.xlu1 %v2068_v27  ;;  %v3102_v32 = vpop.f32.mrf.mxu0 }
 0x3fe   : > { %v3385_v32 = vld [vmem:[%s3983_s4 + $0x10] sm:$0xff]  }
 0x400   : > { %2104 = vadd.xlane.f32.xlu0 %v2103_v33 }
 0x401   : > { %2107 = vadd.xlane.f32.xlu1 %v2106_v39  ;;  %v3387_v39 = vld [vmem:[%s3983_s4 + $0x38] sm:$0xff]  }
 0x404   : > { %2110 = vadd.xlane.f32.xlu0 %v2109_v44  ;;  %v3388_v44 = vld [vmem:[%s3983_s4 + $0x30] sm:$0xff]  }
 0x42e   : > { %v2058_v45 = vpop.xlane.xlu1 %2057 }
 0x42f   : > { %v2074_v47 = vsub.f32 %v1762_v63, %v2058_v45 }
 0x431   : > { %v2085_v49 = vmul.f32 1.442695, %v2074_v47 }
 0x432   : > { %v2064_v50 = vpop.xlane.xlu1 %2063 }
 0x433   : > { %3354 = vpow2.f32 %v2085_v49  ;;  %v2076_v48 = vsub.f32 %v1902_v35, %v2064_v50 }
 0x435   : > { %v2089_v51 = vmul.f32 1.442695, %v2076_v48  ;;  %v3389_v48 = vld [vmem:[%s4008_s9 + $0x3] sm:$0x1] }
 0x437   : > { %3356 = vpow2.f32 %v2089_v51 }
 0x440   : > { %v3355_v53 = vpop.eup %3354 }
 0x441   : > { %v4239_v54 = vmul.f32 %v3355_v53, %v552_v52 }
 0x443   : > { %v2112_v56 = vsel %vm2046_vm1, %v4239_v54, 0.0 }
 0x444   : > { %v3357_v57 = vpop.eup %3356  ;;  %2113 = vadd.xlane.f32.xlu1 %v2112_v56  ;;  %v3390_v56 = vld [vmem:[%s3983_s4 + $0x58] sm:$0xff]  }
 0x445   : > { %v4244_v58 = vmul.f32 %v3357_v57, %v554_v55 }
 0x447   : > { %v2118_v46 = vsel %vm2046_vm1, %v4244_v58, 0.0 }
 0x448   : > { %2119 = vadd.xlane.f32.xlu1 %v2118_v46  ;;  %v3392_v46 = vld [vmem:[%s3983_s4 + $0x50] sm:$0xff]  }
 0x475   : > { %v2061_v43 = vpop.xlane.xlu0 %2060 }
 0x476   : > { %v2075_v59 = vsub.f32 %v1832_v10, %v2061_v43 }
 0x478   : > { %v2087_v60 = vmul.f32 1.442695, %v2075_v59 }
 0x47a   : > { %3358 = vpow2.f32 %v2087_v60 }
 0x485   : > { %v2067_v38 = vpop.xlane.xlu0 %2066 }
 0x486   : > { %v2077_v62 = vsub.f32 %v1972_v37, %v2067_v38  ;;  %v2070_v12 = vpop.xlane.xlu1 %2069 }
 0x487   : > { %v3359_v28 = vpop.eup %3358  ;;  %v2078_v16 = vsub.f32 %v2042_v19, %v2070_v12 }
 0x488   : > { %v2091_v63 = vmul.f32 1.442695, %v2077_v62  ;;  %v4249_v0 = vmul.f32 %v3359_v28, %v553_v61 }
 0x489   : > { %v2093_v1 = vmul.f32 1.442695, %v2078_v16  ;;  %v2105_v35 = vpop.xlane.xlu0 %2104 }
 0x48a   : > { %3360 = vpow2.f32 %v2091_v63  ;;  %v2108_v2 = vpop.xlane.xlu1 %2107  ;;  %v2115_v6 = vsel %vm2046_vm1, %v4249_v0, 0.0 }
 0x48b   : > { %3362 = vpow2.f32 %v2093_v1  ;;  %2116 = vadd.xlane.f32.xlu0 %v2115_v6 }
 0x48c   : > { %3364 = vrcp.f32 %v2105_v35 }
 0x48d   : > { %3366 = vrcp.f32 %v2108_v2  ;;  %v2111_v3 = vpop.xlane.xlu0 %2110 }
 0x48e   : > { %3368 = vrcp.f32 %v2111_v3 }
 0x497   : > { %v3361_v5 = vpop.eup %3360 }
 0x498   : > { %v3363_v7 = vpop.eup %3362  ;;  %v4255_v8 = vmul.f32 %v3361_v5, %v555_v4 }
 0x499   : > { %v3365_v9 = vpop.eup %3364  ;;  %v4257_v42 = vmul.f32 %v3363_v7, %v556_v15 }
 0x49a   : > { %v3367_v10 = vpop.eup %3366  ;;  %v2128_v11 = vmul.f32 %v3365_v9, %v4224_v22  ;;  %v2121_v13 = vsel %vm2046_vm1, %v4255_v8, 0.0 }
 0x49b   : > { %v3369_v14 = vpop.eup %3368  ;;  %v2130_v36 = vmul.f32 %v3367_v10, %v4227_v29  ;;  %2122 = vadd.xlane.f32.xlu0 %v2121_v13  ;;  %v2124_v17 = vsel %vm2046_vm1, %v4257_v42, 0.0  ;;  %v3383_v29 = vld [vmem:[%s3983_s4 + $0x18] sm:$0xff]  }
 0x49c   : > { %2504 = vst.msk [vmem:[%s4266_s18] sm:$0x1] %vm2046_vm1, %v2128_v11  ;;  %v2512_v18 = vadd.f32 %v3380_v31, %v2128_v11  ;;  %v2132_v37 = vmul.f32 %v3369_v14, %v4232_v34  ;;  %2125 = vadd.xlane.f32.xlu1 %v2124_v17  ;;  %v2143_v19 = vpack.c.bf16 %v2128_v11, %v2128_v11  ;;  %v3386_v34 = vld [vmem:[%s3983_s4 + $0x40] sm:$0xff]  }
 0x49d   : > { %2505 = vst.msk [vmem:[%s4266_s18 + $0x1] sm:$0x1] %vm2046_vm1, %v2130_v36  ;;  %v2513_v22 = vadd.f32 %v3381_v21, %v2130_v36  ;;  %v2144_v33 = vpack.c.bf16 %v2130_v36, %v2130_v36 }
 0x49e   : > { %2520 = vst.msk [vmem:[%s4276_s15] sm:$0x1] %vm2046_vm1, %v2512_v18  ;;  %2506 = vst.msk [vmem:[%s4266_s18 + $0x2] sm:$0x1] %vm2046_vm1, %v2132_v37  ;;  %v2514_v25 = vadd.f32 %v3382_v24, %v2132_v37  ;;  %3108 = vmatmul.mubr.msk.bf16.vlgmr.msra.gmra.mxu1 %vm2151_vm2, %v2143_v19  ;;  %v2145_v27 = vpack.c.bf16 %v2132_v37, %v2132_v37 }
 0x49f   : > { %2521 = vst.msk [vmem:[%s4276_s15 + $0x1] sm:$0x1] %vm2046_vm1, %v2513_v22  ;;  %3112 = vmatpush3.bf16.msra.mxu1 %v3383_v29  ;;  %3115 = vmatprep.mubr.msk.bf16.mxu1 %vm3679_vm0, %v3678_v26 }
 0x4a0   : > { %2522 = vst.msk [vmem:[%s4276_s15 + $0x2] sm:$0x1] %vm2046_vm1, %v2514_v25  ;;  %3113 = vmatprep.subr.bf16.mxu1 %v3678_v26  ;;  %3124 = vmatmul.mubr.msk.bf16.vlgmr.msra.gmra.mxu0 %vm2151_vm2, %v2145_v27 }
 0x4a1   : > { %3136 = vmatpush3.bf16.msra.mxu0 %v3384_v30  ;;  %3139 = vmatprep.mubr.msk.bf16.mxu0 %vm3679_vm0, %v3678_v26 }
 0x4a2   : > { %3137 = vmatprep.subr.bf16.mxu0 %v3678_v26 }
 0x4a3   : > { %3114 = vmatpush3.bf16.msra.mxu1 %v3385_v32 }
 0x4a4   : > { %3127 = vmatprep.subr.bf16.mxu1 %v3678_v26 }
 0x4a5   : > { %3138 = vmatpush3.bf16.msra.mxu0 %v3386_v34 }
 0x4a6   : > { %3116 = vmatmul.mubr.msk.bf16.vlgmr.msra.gmra.mxu1 %vm2151_vm2, %v2144_v33  ;;  %3151 = vmatprep.subr.bf16.mxu0 %v3678_v26 }
 0x4a7   : > { %3128 = vmatpush3.bf16.msra.mxu1 %v3387_v39  ;;  %3131 = vmatprep.mubr.msk.bf16.mxu1 %vm3679_vm0, %v3678_v26 }
 0x4a8   : > { %3129 = vmatprep.subr.bf16.mxu1 %v3678_v26 }
 0x4ab   : > { %3130 = vmatpush3.bf16.msra.mxu1 %v3388_v44 }
 0x4ac   : > { %3143 = vmatprep.subr.bf16.mxu1 %v3678_v26 }
 0x4cd   : > { %v2114_v45 = vpop.xlane.xlu1 %2113 }
 0x4ce   : > { %3370 = vrcp.f32 %v2114_v45 }
 0x4d1   : > { %v2120_v47 = vpop.xlane.xlu1 %2119 }
 0x4d2   : > { %3372 = vrcp.f32 %v2120_v47 }
 0x4db   : > { %v3371_v49 = vpop.eup %3370 }
 0x4dc   : > { %v2134_v50 = vmul.f32 %v3371_v49, %v4239_v54  ;;  %v3391_v54 = vld [vmem:[%s4008_s9 + $0x5] sm:$0x1] }
 0x4de   : > { %2507 = vst.msk [vmem:[%s4266_s18 + $0x3] sm:$0x1] %vm2046_vm1, %v2134_v50  ;;  %v2515_v51 = vadd.f32 %v3389_v48, %v2134_v50  ;;  %v2146_v52 = vpack.c.bf16 %v2134_v50, %v2134_v50 }
 0x4df   : > { %v3373_v53 = vpop.eup %3372 }
 0x4e0   : > { %2523 = vst.msk [vmem:[%s4276_s15 + $0x3] sm:$0x1] %vm2046_vm1, %v2515_v51  ;;  %v2138_v55 = vmul.f32 %v3373_v53, %v4244_v58  ;;  %3132 = vmatmul.mubr.msk.bf16.vlgmr.msra.gmra.mxu1 %vm2151_vm2, %v2146_v52 }
 0x4e1   : > { %3144 = vmatpush3.bf16.msra.mxu1 %v3390_v56  ;;  %3147 = vmatprep.mubr.msk.bf16.mxu1 %vm3679_vm0, %v3678_v26 }
 0x4e2   : > { %2509 = vst.msk [vmem:[%s4266_s18 + $0x5] sm:$0x1] %vm2046_vm1, %v2138_v55  ;;  %v2517_v57 = vadd.f32 %v3391_v54, %v2138_v55  ;;  %3145 = vmatprep.subr.bf16.mxu1 %v3678_v26  ;;  %v2148_v43 = vpack.c.bf16 %v2138_v55, %v2138_v55 }
 0x4e4   : > { %2525 = vst.msk [vmem:[%s4276_s15 + $0x5] sm:$0x1] %vm2046_vm1, %v2517_v57 }
 0x4e5   : > { %3146 = vmatpush3.bf16.msra.mxu1 %v3392_v46 }
 0x4e6   : > { %3159 = vmatprep.subr.bf16.mxu1 %v3678_v26 }
 0x4e8   : > { %3148 = vmatmul.mubr.msk.bf16.vlgmr.msra.gmra.mxu1 %vm2151_vm2, %v2148_v43 }
 0x4e9   : > { %3160 = vmatpush3.bf16.msra.mxu1 %v4076_v23  ;;  %3163 = vmatprep.mubr.msk.bf16.mxu1 %vm3679_vm0, %v3678_v26 }
 0x4ea   : > { %3161 = vmatprep.subr.bf16.mxu1 %v3678_v26 }
 0x4ed   : > { %3162 = vmatpush3.bf16.msra.mxu1 %v4070_v20  ;;  %v3393_v20 = vld [vmem:[%s3983_s4 + $0x68] sm:$0xff]  }
 0x514   : > { %v2117_v58 = vpop.xlane.xlu0 %2116 }
 0x515   : > { %3374 = vrcp.f32 %v2117_v58 }
 0x522   : > { %v3375_v59 = vpop.eup %3374 }
 0x523   : > { %v2136_v60 = vmul.f32 %v3375_v59, %v4249_v0  ;;  %v3395_v0 = vld [vmem:[%s4008_s9 + $0x6] sm:$0x1] }
 0x524   : > { %v2123_v38 = vpop.xlane.xlu0 %2122 }
 0x525   : > { %2508 = vst.msk [vmem:[%s4266_s18 + $0x4] sm:$0x1] %vm2046_vm1, %v2136_v60  ;;  %v2516_v61 = vadd.f32 %v2136_v60, %v4099_v40  ;;  %3376 = vrcp.f32 %v2123_v38  ;;  %v2126_v23 = vpop.xlane.xlu1 %2125  ;;  %v2147_v62 = vpack.c.bf16 %v2136_v60, %v2136_v60  ;;  %v3394_v40 = vld [vmem:[%s3983_s4 + $0x60] sm:$0xff]   ;;  %s2534_s4 = scalar_lea.sflag [#allocation13], %s3990_s23 }
 0x526   : > { %3378 = vrcp.f32 %v2126_v23 }
 0x527   : > { %2524 = vst.msk [vmem:[%s4276_s15 + $0x4] sm:$0x1] %vm2046_vm1, %v2516_v61  ;;  %3140 = vmatmul.mubr.msk.bf16.vlgmr.msra.gmra.mxu0 %vm2151_vm2, %v2147_v62 }
 0x528   : > { %3152 = vmatpush3.bf16.msra.mxu0 %v3393_v20  ;;  %3155 = vmatprep.mubr.msk.bf16.mxu0 %vm3679_vm0, %v3678_v26 }
 0x529   : > { %3153 = vmatprep.subr.bf16.mxu0 %v3678_v26 }
 0x52c   : > { %3154 = vmatpush3.bf16.msra.mxu0 %v3394_v40 }
 0x532   : > { %v3377_v12 = vpop.eup %3376 }
 0x533   : > { %v3379_v28 = vpop.eup %3378  ;;  %v2140_v16 = vmul.f32 %v3377_v12, %v4255_v8 }
 0x534   : > { %v2142_v63 = vmul.f32 %v3379_v28, %v4257_v42 }
 0x535   : > { %2510 = vst.msk [vmem:[%s4266_s18 + $0x6] sm:$0x1] %vm2046_vm1, %v2140_v16  ;;  %v2518_v1 = vadd.f32 %v3395_v0, %v2140_v16  ;;  %v2149_v35 = vpack.c.bf16 %v2140_v16, %v2140_v16 }
 0x536   : > { %2511 = vst.msk [vmem:[%s4266_s18 + $0x7] sm:$0x1] %vm2046_vm1, %v2142_v63  ;;  %v2519_v2 = vadd.f32 %v2142_v63, %v4103_v41  ;;  %v2150_v26 = vpack.c.bf16 %v2142_v63, %v2142_v63 }
 0x537   : > { %2526 = vst.msk [vmem:[%s4276_s15 + $0x6] sm:$0x1] %vm2046_vm1, %v2518_v1  ;;  %3156 = vmatmul.mubr.msk.bf16.vlgmr.msra.gmra.mxu0 %vm2151_vm2, %v2149_v35 }
 0x538   : > { %2527 = vst.msk [vmem:[%s4276_s15 + $0x7] sm:$0x1] %vm2046_vm1, %v2519_v2  ;;  %3164 = vmatmul.mubr.msk.bf16.vlgmr.msra.gmra.mxu1 %vm2151_vm2, %v2150_v26 }
 0x55e   : > { %v2189_v6 = vpop.f32.mrf.mxu1 }
 0x55f   : > { %2496 = vst [vmem:[%s4360_s28] sm:$0x1] %v2189_v6 }
 0x560   : > { %v3109_v3 = vpop.f32.mrf.mxu1  ;;  %v2275_v41 = vpop.f32.mrf.mxu0 }
 0x561   : > { %2498 = vst [vmem:[%s4360_s28 + $0x2] sm:$0x1] %v2275_v41 }
 0x562   : > { %v2192_v4 = vpop.f32.mrf.mxu1  ;;  %v3125_v15 = vpop.f32.mrf.mxu0 }
 0x564   : > { %v3110_v5 = vpop.f32.mrf.mxu1  ;;  %v2278_v7 = vpop.f32.mrf.mxu0 }
 0x566   : > { %v2232_v8 = vpop.f32.mrf.mxu1  ;;  %v3126_v9 = vpop.f32.mrf.mxu0 }
 0x567   : > { %2497 = vst [vmem:[%s4360_s28 + $0x1] sm:$0x1] %v2232_v8 }
 0x568   : > { %v3117_v42 = vpop.f32.mrf.mxu1 }
 0x56a   : > { %v2235_v10 = vpop.f32.mrf.mxu1 }
 0x56c   : > { %v3118_v11 = vpop.f32.mrf.mxu1 }
 0x56d   : > { %3547 = shalt.err (!%p3544_p1)
}
 0x56e   : > { %s3548_s26 = scalar_lea.hbm %s4372_s1, 128  ;;  %s3552_s20 = scalar_lea.hbm %s4497_s8, 256 }
 0x56f   : > { %p3549_p2 = scmp.ne.s32.totalorder %s4372_s1, %s3548_s26  ;;  %p3553_p7 = scmp.lt.s32.totalorder %s4372_s1, %s4497_s8 }
 0x570   : > { %p3554_p6 = scmp.lt.s32.totalorder %s3552_s20, %s3548_s26 }
 0x571   : > { %p3550_p3 = pnand %p3549_p2, %p4543_p10 }
 0x572   : > { %p3555_p8 = por %p3554_p6, %p3553_p7 }
 0x573   : > { %p3551_p11 = pneg %p3550_p3 }
 0x575   : > { %p3556_p9 = pnand %p3555_p8, %p3551_p11 }
 0x577   : > { %3559 = shalt.err (!%p3556_p9)
}
 0x578   : > { %s3681_s27 = smov 16   ;;  %s3682_s18 = smov 1  }
 0x579   : > { %3180 = dma.vmem_to_hbm [thread:$0]  (%p4543_p10), %s4375_s11, 128, %s4372_s1, %s2534_s4, %s3681_s27, %s3681_s27, %s3682_s18  }
 0x57a   : > { %s4544_s29 = sld [smem:[#allocation29_spill]]  ;;  %s2584_s22 = sshll.u32 %s4276_s15, 4  ;;  %s2585_s22 = int_to_ptr.vmem [resolvable:$true] %s2584_s22 }
 0x57b   : > { %s3560_s16 = scalar_lea.vmem %s2585_s22, 128  ;;  %s3683_s26 = smov [#allocation14]  }
 0x57c   : > { %p3561_p5 = scmp.ne.s32.totalorder %s2585_s22, %s3560_s16  ;;  %s3564_s7 = sshll.u32 %s3683_s26, 4  ;;  %s3565_s7 = int_to_ptr.vmem [resolvable:$false] %s3564_s7 }
 0x57d   : > { %s3566_s9 = scalar_lea.vmem %s3565_s7, 256  ;;  %p3567_p0 = scmp.lt.s32.totalorder %s2585_s22, %s3565_s7 }
 0x57e   : > { %p3562_p12 = pnand %p3561_p5, %p4543_p10  ;;  %p3568_p13 = scmp.lt.s32.totalorder %s3566_s9, %s3560_s16 }
 0x580   : > { %s4407_s13 = scalar_lea.hbm %s4544_s29, %s4366_s19  ;;  %p3563_p4 = pneg %p3562_p12 }
 0x581   : > { %p3569_p1 = por %p3568_p13, %p3567_p0 }
 0x583   : > { %p3570_p2 = pnand %p3569_p1, %p3563_p4 }
 0x585   : > { %3573 = shalt.err (!%p3570_p2)
}
 0x586   : > { %s3574_s15 = scalar_lea.hbm %s4407_s13, 128  ;;  %s3578_s20 = scalar_lea.hbm %s4544_s29, 256 }
 0x587   : > { %p3575_p3 = scmp.ne.s32.totalorder %s4407_s13, %s3574_s15  ;;  %p3579_p6 = scmp.lt.s32.totalorder %s4407_s13, %s4544_s29 }
 0x588   : > { %p3580_p8 = scmp.lt.s32.totalorder %s3578_s20, %s3574_s15 }
 0x589   : > { %p3576_p11 = pnand %p3575_p3, %p4543_p10 }
 0x58a   : > { %p3581_p9 = por %p3580_p8, %p3579_p6 }
 0x58b   : > { %p3577_p7 = pneg %p3576_p11 }
 0x58d   : > { %p3582_p5 = pnand %p3581_p9, %p3577_p7 }
 0x58f   : > { %3585 = shalt.err (!%p3582_p5)
}
 0x590   : > { %3181 = dma.vmem_to_hbm [thread:$0]  (%p4543_p10), %s2585_s22, 128, %s4407_s13, %s2534_s4, %s3681_s27, %s3681_s27, %s3682_s18  }
 0x591   : > { %s2552_s23 = sshll.u32 %s4360_s28, 4  ;;  %s4545_s25 = sld [smem:[#allocation28_spill]]  ;;  %s4435_s23 = int_to_ptr.vmem [resolvable:$true] %s2552_s23 }
 0x592   : > { %s2529_s22 = scalar_lea.sflag [#allocation4], %s3979_s17  ;;  %s3586_s16 = scalar_lea.vmem %s4435_s23, 128 }
 0x593   : > { %p3587_p12 = scmp.ne.s32.totalorder %s4435_s23, %s3586_s16  ;;  %s3684_s26 = smov [#allocation11]  }
 0x594   : > { %s3590_s7 = sshll.u32 %s3684_s26, 4  ;;  %s3591_s7 = int_to_ptr.vmem [resolvable:$false] %s3590_s7 }
 0x595   : > { %p3588_p4 = pnand %p3587_p12, %p4543_p10  ;;  %s3592_s9 = scalar_lea.vmem %s3591_s7, 256 }
 0x596   : > { %p3593_p13 = scmp.lt.s32.totalorder %s4435_s23, %s3591_s7  ;;  %p3594_p1 = scmp.lt.s32.totalorder %s3592_s9, %s3586_s16 }
 0x597   : > { %s4441_s13 = scalar_lea.hbm %s4545_s25, %s4366_s19  ;;  %p3589_p0 = pneg %p3588_p4 }
 0x598   : > { %p3595_p2 = por %p3594_p1, %p3593_p13 }
 0x59a   : > { %p3596_p3 = pnand %p3595_p2, %p3589_p0 }
 0x5a0   : > { %v2318_v13 = vpop.f32.mrf.mxu1 }
 0x5a1   : > { %2499 = vst [vmem:[%s4360_s28 + $0x3] sm:$0x1] %v2318_v13 }
 0x5a2   : > { %v3133_v14 = vpop.f32.mrf.mxu1 }
 0x5a4   : > { %v2321_v36 = vpop.f32.mrf.mxu1 }
 0x5a6   : > { %v3134_v17 = vpop.f32.mrf.mxu1 }
 0x5a8   : > { %v2404_v31 = vpop.f32.mrf.mxu1 }
 0x5a9   : > { %2501 = vst [vmem:[%s4360_s28 + $0x5] sm:$0x1] %v2404_v31 }
 0x5aa   : > { %v3149_v18 = vpop.f32.mrf.mxu1 }
 0x5ac   : > { %v2407_v37 = vpop.f32.mrf.mxu1 }
 0x5ae   : > { %v3150_v19 = vpop.f32.mrf.mxu1 }
 0x5e7   : > { %v2361_v21 = vpop.f32.mrf.mxu0 }
 0x5e8   : > { %2500 = vst [vmem:[%s4360_s28 + $0x4] sm:$0x1] %v2361_v21 }
 0x5e9   : > { %v3141_v22 = vpop.f32.mrf.mxu0 }
 0x5eb   : > { %v2364_v24 = vpop.f32.mrf.mxu0 }
 0x5ed   : > { %v3142_v25 = vpop.f32.mrf.mxu0 }
 0x5f7   : > { %v2447_v27 = vpop.f32.mrf.mxu0 }
 0x5f8   : > { %2502 = vst [vmem:[%s4360_s28 + $0x6] sm:$0x1] %v2447_v27  ;;  %v2490_v29 = vpop.f32.mrf.mxu1 }
 0x5f9   : > { %2503 = vst [vmem:[%s4360_s28 + $0x7] sm:$0x1] %v2490_v29  ;;  %v3157_v30 = vpop.f32.mrf.mxu0 }
 0x5fa   : > { %v3165_v32 = vpop.f32.mrf.mxu1 }
 0x5fb   : > { %3599 = shalt.err (!%p3596_p3)
}
 0x5fc   : > { %s3600_s28 = scalar_lea.hbm %s4441_s13, 128  ;;  %s3604_s15 = scalar_lea.hbm %s4545_s25, 256 }
 0x5fd   : > { %p3601_p11 = scmp.ne.s32.totalorder %s4441_s13, %s3600_s28  ;;  %p3605_p8 = scmp.lt.s32.totalorder %s4441_s13, %s4545_s25 }
 0x5fe   : > { %p3606_p9 = scmp.lt.s32.totalorder %s3604_s15, %s3600_s28 }
 0x5ff   : > { %p3602_p7 = pnand %p3601_p11, %p4543_p10 }
 0x600   : > { %p3607_p5 = por %p3606_p9, %p3605_p8 }
 0x601   : > { %p3603_p6 = pneg %p3602_p7 }
 0x603   : > { %p3608_p12 = pnand %p3607_p5, %p3603_p6 }
 0x605   : > { %3611 = shalt.err (!%p3608_p12)
}
 0x606   : > { %3179 = dma.vmem_to_hbm [thread:$0]  (%p4543_p10), %s4435_s23, 128, %s4441_s13, %s2529_s22, %s3681_s27, %s3681_s27, %s3682_s18   ;;  %v2450_v33 = vpop.f32.mrf.mxu0  ;;  %v2493_v34 = vpop.f32.mrf.mxu1 }
 0x608   : > { %v3158_v39 = vpop.f32.mrf.mxu0  ;;  %v3166_v44 = vpop.f32.mrf.mxu1 }
 0x609 PF: > { %s4546_s20 = sld [smem:[#allocation21_spill]]  ;;  %p4549_p0 = scmp.ge.s32.totalorder %s3666_s12, 2 }
 0x60a   : > { %s4547_s24 = sld [smem:[#allocation25_spill]] }
 0x60f   : > { %s2599_s14 = sand.u32 1, %s4546_s20  }
 0x610   : > { %p4548_p4 = scmp.ne.s32.totalorder %s4547_s24, 0  ;;  %s2600_s21 = scalar_lea.sflag [#allocation4], %s2599_s14 }
 0x612   : > { %p3203_p13 = pnand %p4549_p0, %p4548_p4 }
 0x614   : > { %p3204_p1 = pneg %p3203_p13 }
 0x616   : > { %3645 = dma.done.wait (%p3204_p1), %s2600_s21, 128  }
 0x617   : > { %3647 = vsyncadd (%p3204_p1), %s2600_s21, 4294967168  ;;  %s4550_s4 = sadd.s32 4294967294, %s3666_s12  }
 0x618   : > { %s2608_s30 = sand.u32 1, %s4550_s4  }
 0x619   : > { %s2609_s27 = scalar_lea.sflag [#allocation13], %s2608_s30 }
 0x61a   : > { %3649 = dma.done.wait (%p3204_p1), %s2609_s27, 256  }
 0x61b   : > { %3651 = vsyncadd (%p3204_p1), %s2609_s27, 4294967040  ;;  %s4551_s12 = sld [smem:[#allocation23_spill]]  ;;  %s4554_s30 = smov %s3658_s10 }
 0x61c   : > { %s4552_s18 = sld [smem:[#allocation22_spill]] }
 0x61d   : > { %s4553_s11 = sld [smem:[#allocation24_spill]] }
 0x621   : > { %p32_p10 = scmp.ge.s32.totalorder %s4551_s12, 4  }
 0x622   : > { %s4555_s10 = smov %s4552_s18 }
 0x623   :  { %34 = sbr.rel (!%p32_p10) target bundleno = 16 (0x10), region = 166 }
 0x628   :  { %2623 = vsyncpa [#allocation3], 1 }
 0x629   :  { %2625 = vsyncpa [#allocation3 + $0x1], 1 }
 0x62a   :  { %2626 = vsyncpa [#allocation6], 1 }
 0x62b   :  { %2628 = vsyncpa [#allocation6 + $0x1], 1 }
 0x62c   :  { %2629 = vsyncpa [#allocation9], 1 }
 0x62d   :  { %2631 = vsyncpa [#allocation9 + $0x1], 1 }
 0x62e   :  { %2632 = vsyncpa [#allocation4], 1 }
 0x62f   :  { %2634 = vsyncpa [#allocation4 + $0x1], 1 }
 0x630   :  { %2635 = vsyncpa [#allocation13], 1 }
 0x631   :  { %2637 = vsyncpa [#allocation13 + $0x1], 1 }

</bundles_post_ra>
